<compile_context>
chip_gen: v7x
topology: tpu7x:2x2x1
jax: 0.10.0
libtpu: 0.0.40
codegen_flags: <defaults>
</compile_context>

<pallas_src>
import functools
import math

import jax
import jax.numpy as jnp
from jax import lax
from jax.experimental import pallas as pl
from jax.experimental.pallas import tpu as pltpu

LN_EPS = 1e-5
# Conservative VMEM cap so the same tiling works on v5e/v6e (128 MiB) and v7x (64 MiB).
_VMEM_LIMIT = 48 * 1024 * 1024


# ----------------------------------------------------------------------------
# Small helpers
# ----------------------------------------------------------------------------

def _tile(dim, target, align):
    """Largest block size <= target that divides `dim` and is a multiple of `align`
    (falls back to the full dim, which is always a legal block size)."""
    if dim <= target:
        return dim
    t = (target // align) * align
    while t >= align:
        if dim % t == 0:
            return t
        t -= align
    return dim


def _compiler_params(dimension_semantics):
    return pltpu.CompilerParams(dimension_semantics=dimension_semantics,
                                vmem_limit_bytes=_VMEM_LIMIT)


def _layernorm(y, g, b, eps=LN_EPS):
    """Row-wise LayerNorm with affine params (f32 statistics)."""
    mean = jnp.mean(y, axis=-1, keepdims=True)
    var = jnp.mean(jnp.square(y - mean), axis=-1, keepdims=True)
    return (y - mean) * lax.rsqrt(var + eps) * g + b


def _mha_core(q, k, v, mask, w_o, num_heads):
    """Multi-head attention core, fully in-VMEM.

    q: (Lq, D) -- already pre-scaled by 1/sqrt(dh) (folded into the Q weights).
    k, v: (Lk, D).  mask: int tensor broadcastable to (Lq, Lk); 0 = do not attend.
    w_o: (D, D) output projection in (in, out) layout.
    Returns the projected attention output (Lq, D) in f32 (no concat: the per-head
    slice of w_o is accumulated directly -> lane-dense output, no head transposes).
    """
    Lq, D = q.shape
    dh = D // num_heads
    # One select for all heads: additive -1e9 bias (exact `mask == 0` semantics).
    neg_bias = jnp.where(mask != 0, 0.0, -1e9).astype(jnp.float32)   # (Lq or 1, Lk)
    out = jnp.zeros((Lq, D), jnp.float32)
    for h in range(num_heads):                      # static unroll over heads
        sl = slice(h * dh, (h + 1) * dh)
        q_h, k_h, v_h = q[:, sl], k[:, sl], v[:, sl]
        # scores = q_h @ k_h^T  (contract over dh)
        s = lax.dot_general(q_h, k_h, (((1,), (1,)), ((), ())),
                            preferred_element_type=jnp.float32)       # (Lq, Lk)
        s = s + neg_bias
        m = jnp.max(s, axis=-1, keepdims=True)
        p = jnp.exp(s - m)
        l = jnp.sum(p, axis=-1, keepdims=True)
        # normalize after the PV matmul: divide the small (Lq, dh) tensor, not (Lq, Lk)
        ctx = jnp.dot(p, v_h, preferred_element_type=jnp.float32) / l  # (Lq, dh)
        out = out + jnp.dot(ctx, w_o[sl, :], preferred_element_type=jnp.float32)
    return out


# ----------------------------------------------------------------------------
# Fused per-layer kernels (grid over batch, "parallel")
# ----------------------------------------------------------------------------

def _self_attn_kernel(x_ref, mask_ref, wqkv_ref, bqkv_ref, wo_ref, bo_ref,
                      g_ref, b_ref, o_ref, *, num_heads):
    """LN( x + O(MHA(x, x, look_ahead_mask)) ), QKV fused into one matmul."""
    x = x_ref[0]                                                     # (Lq, D)
    D = x.shape[-1]
    qkv = jnp.dot(x, wqkv_ref[...],
                  preferred_element_type=jnp.float32) + bqkv_ref[...]  # (Lq, 3D)
    attn = _mha_core(qkv[:, :D], qkv[:, D:2 * D], qkv[:, 2 * D:],
                     mask_ref[0], wo_ref[...], num_heads)
    y = attn + bo_ref[...] + x                                       # bias + residual
    o_ref[0] = _layernorm(y, g_ref[...], b_ref[...]).astype(o_ref.dtype)


def _cross_attn_kernel(x_ref, enc_ref, mask_ref, wq_ref, bq_ref, wkv_ref, bkv_ref,
                       wo_ref, bo_ref, g_ref, b_ref, o_ref, *, num_heads):
    """LN( x + O(MHA(x, encoder_output, padding_mask)) ), KV fused into one matmul."""
    x = x_ref[0]                                                     # (Lq, D)
    enc = enc_ref[0]                                                 # (Lk, D)
    D = x.shape[-1]
    q = jnp.dot(x, wq_ref[...],
                preferred_element_type=jnp.float32) + bq_ref[...]    # (Lq, D)
    kv = jnp.dot(enc, wkv_ref[...],
                 preferred_element_type=jnp.float32) + bkv_ref[...]  # (Lk, 2D)
    attn = _mha_core(q, kv[:, :D], kv[:, D:], mask_ref[0], wo_ref[...], num_heads)
    y = attn + bo_ref[...] + x
    o_ref[0] = _layernorm(y, g_ref[...], b_ref[...]).astype(o_ref.dtype)


def _ffn_kernel(x_ref, w1_ref, b1_ref, w2_ref, b2_ref, g_ref, b_ref, o_ref):
    """LN( x + W2 @ relu(W1 @ x) ) with the dff intermediate held in VMEM."""
    x = x_ref[...]                                                   # (tm, D)
    h = jnp.dot(x, w1_ref[...], preferred_element_type=jnp.float32) + b1_ref[...]
    h = jnp.maximum(h, 0.0)
    y = jnp.dot(h, w2_ref[...], preferred_element_type=jnp.float32) + b2_ref[...] + x
    o_ref[...] = _layernorm(y, g_ref[...], b_ref[...]).astype(o_ref.dtype)


def _matmul_bias_kernel(x_ref, w_ref, b_ref, o_ref, acc_ref):
    """Tiled o = x @ w + b with f32 VMEM accumulator over the K grid axis."""
    @pl.when(pl.program_id(2) == 0)
    def _():
        acc_ref[...] = jnp.zeros_like(acc_ref)

    acc_ref[...] += jnp.dot(x_ref[...], w_ref[...],
                            preferred_element_type=jnp.float32)

    @pl.when(pl.program_id(2) == pl.num_programs(2) - 1)
    def _():
        o_ref[...] = (acc_ref[...] + b_ref[...]).astype(o_ref.dtype)


# ----------------------------------------------------------------------------
# pallas_call wrappers
# ----------------------------------------------------------------------------

def self_attention_block(x, mask_i32, p, num_heads):
    B, L, D = x.shape
    full = lambda b: (0, 0)
    return pl.pallas_call(
        functools.partial(_self_attn_kernel, num_heads=num_heads),
        out_shape=jax.ShapeDtypeStruct((B, L, D), x.dtype),
        grid_spec=pltpu.PrefetchScalarGridSpec(
            num_scalar_prefetch=0, grid=(B,),
            in_specs=[
                pl.BlockSpec((1, L, D), lambda b: (b, 0, 0)),       # x
                pl.BlockSpec((1, L, L), lambda b: (b, 0, 0)),       # look-ahead mask
                pl.BlockSpec((D, 3 * D), full),                     # packed Wqkv
                pl.BlockSpec((1, 3 * D), full),                     # packed bqkv
                pl.BlockSpec((D, D), full),                         # Wo
                pl.BlockSpec((1, D), full),                         # bo
                pl.BlockSpec((1, D), full),                         # LN gamma
                pl.BlockSpec((1, D), full),                         # LN beta
            ],
            out_specs=pl.BlockSpec((1, L, D), lambda b: (b, 0, 0))),
        compiler_params=_compiler_params(("parallel",)),
    )(x, mask_i32, p["w_qkv"], p["b_qkv"], p["w_o"], p["b_o"], p["ln_g"], p["ln_b"])


def cross_attention_block(x, enc, pad_mask_i32, p, num_heads):
    B, Lq, D = x.shape
    Lk = enc.shape[1]
    full = lambda b: (0, 0)
    return pl.pallas_call(
        functools.partial(_cross_attn_kernel, num_heads=num_heads),
        out_shape=jax.ShapeDtypeStruct((B, Lq, D), x.dtype),
        grid_spec=pltpu.PrefetchScalarGridSpec(
            num_scalar_prefetch=0, grid=(B,),
            in_specs=[
                pl.BlockSpec((1, Lq, D), lambda b: (b, 0, 0)),      # x (decoder)
                pl.BlockSpec((1, Lk, D), lambda b: (b, 0, 0)),      # encoder output
                pl.BlockSpec((1, 1, Lk), lambda b: (b, 0, 0)),      # padding mask
                pl.BlockSpec((D, D), full),                         # Wq (pre-scaled)
                pl.BlockSpec((1, D), full),                         # bq (pre-scaled)
                pl.BlockSpec((D, 2 * D), full),                     # packed Wkv
                pl.BlockSpec((1, 2 * D), full),                     # packed bkv
                pl.BlockSpec((D, D), full),                         # Wo
                pl.BlockSpec((1, D), full),                         # bo
                pl.BlockSpec((1, D), full),                         # LN gamma
                pl.BlockSpec((1, D), full),                         # LN beta
            ],
            out_specs=pl.BlockSpec((1, Lq, D), lambda b: (b, 0, 0))),
        compiler_params=_compiler_params(("parallel",)),
    )(x, enc, pad_mask_i32, p["w_q"], p["b_q"], p["w_kv"], p["b_kv"],
      p["w_o"], p["b_o"], p["ln_g"], p["ln_b"])


def ffn_block(x, p):
    B, L, D = x.shape
    M = B * L
    dff = p["w1"].shape[1]
    tm = _tile(M, 256, 8)                       # row tiles over B*L, "parallel"
    x2d = x.reshape(M, D)
    full = lambda i: (0, 0)
    out = pl.pallas_call(
        _ffn_kernel,
        out_shape=jax.ShapeDtypeStruct((M, D), x.dtype),
        grid_spec=pltpu.PrefetchScalarGridSpec(
            num_scalar_prefetch=0, grid=(M // tm,),
            in_specs=[
                pl.BlockSpec((tm, D), lambda i: (i, 0)),            # x rows
                pl.BlockSpec((D, dff), full),                       # W1
                pl.BlockSpec((1, dff), full),                       # b1
                pl.BlockSpec((dff, D), full),                       # W2
                pl.BlockSpec((1, D), full),                         # b2
                pl.BlockSpec((1, D), full),                         # LN gamma
                pl.BlockSpec((1, D), full),                         # LN beta
            ],
            out_specs=pl.BlockSpec((tm, D), lambda i: (i, 0))),
        compiler_params=_compiler_params(("parallel",)),
    )(x2d, p["w1"], p["b1"], p["w2"], p["b2"], p["ln_g"], p["ln_b"])
    return out.reshape(B, L, D)


def linear(x2d, w, b, *, tm=256, tn=256, tk=512):
    """Tiled x2d:(M,K) @ w:(K,N) + b:(1,N); weights already in (in, out) layout."""
    M, K = x2d.shape
    N = w.shape[1]
    tm, tn, tk = _tile(M, tm, 8), _tile(N, tn, 128), _tile(K, tk, 128)
    return pl.pallas_call(
        _matmul_bias_kernel,
        out_shape=jax.ShapeDtypeStruct((M, N), x2d.dtype),
        grid_spec=pltpu.PrefetchScalarGridSpec(
            num_scalar_prefetch=0, grid=(M // tm, N // tn, K // tk),
            in_specs=[pl.BlockSpec((tm, tk), lambda i, j, k: (i, k)),
                      pl.BlockSpec((tk, tn), lambda i, j, k: (k, j)),
                      pl.BlockSpec((1, tn), lambda i, j, k: (0, j))],
            out_specs=pl.BlockSpec((tm, tn), lambda i, j, k: (i, j)),
            scratch_shapes=[pltpu.VMEM((tm, tn), jnp.float32)]),
        compiler_params=_compiler_params(("parallel", "parallel", "arbitrary")),
    )(x2d, w, b)


# ----------------------------------------------------------------------------
# Decoder forward (plain-JAX glue around the fused kernels)
# ----------------------------------------------------------------------------

def decoder_layer(x, enc, la_mask_i32, pad_mask_i32, p, num_heads):
    x = self_attention_block(x, la_mask_i32, p["self_attn"], num_heads)
    x = cross_attention_block(x, enc, pad_mask_i32, p["cross_attn"], num_heads)
    x = ffn_block(x, p["ffn"])
    return x


def decoder_forward(params, x_ids, encoder_output, look_ahead_mask, padding_mask,
                    num_heads):
    B, L = x_ids.shape
    D = params["embedding"].shape[1]
    Lk = encoder_output.shape[1]

    # token embedding lookup (gather = plain-JAX glue) + positional encoding;
    # dropout = identity (eval mode).
    x = jnp.take(params["embedding"], x_ids, axis=0) + params["pos_enc"][:L][None, :, :]

    # Small integer masks, no head broadcast; `mask == 0` semantics preserved exactly.
    la = (jnp.broadcast_to(look_ahead_mask, (B, 1, L, L)) != 0).astype(jnp.int32)
    la = la.reshape(B, L, L)
    pm = (jnp.broadcast_to(padding_mask, (B, 1, 1, Lk)) != 0).astype(jnp.int32)
    pm = pm.reshape(B, 1, Lk)

    for lp in params["layers"]:
        x = decoder_layer(x, encoder_output, la, pm, lp, num_heads)

    logits = linear(x.reshape(B * L, D), params["out_w"], params["out_b"])
    return logits.reshape(B, L, -1)


# ----------------------------------------------------------------------------
# Parameter init (PyTorch-style shapes) + one-time pre-packing for the kernels
# ----------------------------------------------------------------------------

def positional_encoding(max_len, d_model):
    pos = jnp.arange(max_len, dtype=jnp.float32)[:, None]
    i = jnp.arange(0, d_model, 2, dtype=jnp.float32)
    div = jnp.exp(-jnp.log(10000.0) * i / d_model)
    pe = jnp.zeros((max_len, d_model), dtype=jnp.float32)
    pe = pe.at[:, 0::2].set(jnp.sin(pos * div))
    pe = pe.at[:, 1::2].set(jnp.cos(pos * div))
    return pe


def init_pytorch_style_params(key, vocab_size, num_layers, d_model, dff):
    """Synthetic weights in PyTorch (out, in) layout."""
    cnt = [0]

    def nk():
        cnt[0] += 1
        return jax.random.fold_in(key, cnt[0])

    def w(shape, scale=0.02):
        return (scale * jax.random.normal(nk(), shape)).astype(jnp.float32)

    def attn():
        return {"wq": w((d_model, d_model)), "bq": w((d_model,)),
                "wk": w((d_model, d_model)), "bk": w((d_model,)),
                "wv": w((d_model, d_model)), "bv": w((d_model,)),
                "wo": w((d_model, d_model)), "bo": w((d_model,))}

    layers = []
    for _ in range(num_layers):
        layers.append({
            "self_attn": attn(), "cross_attn": attn(),
            "ffn_w1": w((dff, d_model)), "ffn_b1": w((dff,)),
            "ffn_w2": w((d_model, dff)), "ffn_b2": w((d_model,)),
            "ln1_g": jnp.ones((d_model,), jnp.float32), "ln1_b": jnp.zeros((d_model,), jnp.float32),
            "ln2_g": jnp.ones((d_model,), jnp.float32), "ln2_b": jnp.zeros((d_model,), jnp.float32),
            "ln3_g": jnp.ones((d_model,), jnp.float32), "ln3_b": jnp.zeros((d_model,), jnp.float32),
        })
    return {"embedding": w((vocab_size, d_model), scale=1.0),
            "layers": layers,
            "out_w": w((vocab_size, d_model)), "out_b": w((vocab_size,))}


def pack_params(pt, num_heads, d_model, max_len):
    """One-time pre-pack: (in, out) layout, QKV concat, 1/sqrt(dh) folded into Q."""
    dh = d_model // num_heads
    scale = 1.0 / math.sqrt(dh)
    row = lambda v: v.reshape(1, -1)

    def pack_self(a):
        return {"w_qkv": jnp.concatenate([a["wq"].T * scale, a["wk"].T, a["wv"].T], axis=1),
                "b_qkv": row(jnp.concatenate([a["bq"] * scale, a["bk"], a["bv"]])),
                "w_o": a["wo"].T, "b_o": row(a["bo"])}

    def pack_cross(a):
        return {"w_q": a["wq"].T * scale, "b_q": row(a["bq"] * scale),
                "w_kv": jnp.concatenate([a["wk"].T, a["wv"].T], axis=1),
                "b_kv": row(jnp.concatenate([a["bk"], a["bv"]])),
                "w_o": a["wo"].T, "b_o": row(a["bo"])}

    layers = []
    for lp in pt["layers"]:
        sa = pack_self(lp["self_attn"])
        sa["ln_g"], sa["ln_b"] = row(lp["ln1_g"]), row(lp["ln1_b"])
        ca = pack_cross(lp["cross_attn"])
        ca["ln_g"], ca["ln_b"] = row(lp["ln2_g"]), row(lp["ln2_b"])
        ffn = {"w1": lp["ffn_w1"].T, "b1": row(lp["ffn_b1"]),
               "w2": lp["ffn_w2"].T, "b2": row(lp["ffn_b2"]),
               "ln_g": row(lp["ln3_g"]), "ln_b": row(lp["ln3_b"])}
        layers.append({"self_attn": sa, "cross_attn": ca, "ffn": ffn})

    return {"embedding": pt["embedding"],
            "pos_enc": positional_encoding(max_len, d_model),
            "layers": layers,
            "out_w": pt["out_w"].T, "out_b": row(pt["out_b"])}


# ----------------------------------------------------------------------------

if __name__ == "__main__":
    vocab_size = 50
    num_layers = 2
    d_model = 32
    dff = 64
    num_heads = 4
    max_len = 64
    B, L_dec, L_enc = 2, 8, 8

    key = jax.random.PRNGKey(0)
    k_par, k_ids, k_enc = jax.random.split(key, 3)

    pt_params = init_pytorch_style_params(k_par, vocab_size, num_layers, d_model, dff)
    params = pack_params(pt_params, num_heads, d_model, max_len)   # pre-pack once

    x_ids = jax.random.randint(k_ids, (B, L_dec), 0, vocab_size, dtype=jnp.int32)
    encoder_output = jax.random.normal(k_enc, (B, L_enc, d_model), dtype=jnp.float32)
    # look-ahead mask: 1 = attend, 0 = masked (lower-triangular causal mask)
    look_ahead_mask = jnp.tril(jnp.ones((L_dec, L_dec), jnp.float32))[None, None, :, :]
    look_ahead_mask = jnp.broadcast_to(look_ahead_mask, (B, 1, L_dec, L_dec))
    # padding mask: 1 = valid encoder token
    padding_mask = jnp.ones((B, 1, 1, L_enc), jnp.float32)

    fwd = jax.jit(functools.partial(decoder_forward, num_heads=num_heads))
    out = fwd(params, x_ids, encoder_output, look_ahead_mask, padding_mask)
    out = jax.block_until_ready(out)

    assert out.shape == (B, L_dec, vocab_size), out.shape
    assert bool(jnp.all(jnp.isfinite(out)))
    # TODO(synk): dropout layers are identity here (eval-mode semantics); training-mode
    # dropout RNG is not reproduced.
    print("KERNEL_OK")
</pallas_src>

<mosaic_0001>
module attributes {stable_mosaic.version = 11 : i64} {
  func.func @_self_attn_kernel(%arg0: i32, %arg1: memref<1x8x32xf32, #tpu.memory_space<vmem>>, %arg2: memref<1x8x8xi32, #tpu.memory_space<vmem>>, %arg3: memref<32x96xf32, #tpu.memory_space<vmem>>, %arg4: memref<1x96xf32, #tpu.memory_space<vmem>>, %arg5: memref<32x32xf32, #tpu.memory_space<vmem>>, %arg6: memref<1x32xf32, #tpu.memory_space<vmem>>, %arg7: memref<1x32xf32, #tpu.memory_space<vmem>>, %arg8: memref<1x32xf32, #tpu.memory_space<vmem>>, %arg9: memref<1x8x32xf32, #tpu.memory_space<vmem>>) attributes {dimension_semantics = [#tpu.dimension_semantics<parallel>], iteration_bounds = array<i64: 2>, scalar_prefetch = 0 : i64, scratch_operands = 0 : i64, tpu.core_type = #tpu.core_type<tc>, window_params = [{transform_indices = @transform_0, window_bounds = array<i64: 1, 8, 32>}, {transform_indices = @transform_1, window_bounds = array<i64: 1, 8, 8>}, {pipeline_mode = #tpu.pipeline_mode<synchronous>, transform_indices = @transform_2, window_bounds = array<i64: 32, 96>}, {pipeline_mode = #tpu.pipeline_mode<synchronous>, transform_indices = @transform_3, window_bounds = array<i64: 1, 96>}, {pipeline_mode = #tpu.pipeline_mode<synchronous>, transform_indices = @transform_4, window_bounds = array<i64: 32, 32>}, {pipeline_mode = #tpu.pipeline_mode<synchronous>, transform_indices = @transform_5, window_bounds = array<i64: 1, 32>}, {pipeline_mode = #tpu.pipeline_mode<synchronous>, transform_indices = @transform_6, window_bounds = array<i64: 1, 32>}, {pipeline_mode = #tpu.pipeline_mode<synchronous>, transform_indices = @transform_7, window_bounds = array<i64: 1, 32>}, {transform_indices = @transform_8, window_bounds = array<i64: 1, 8, 32>}]} {
    %c0 = arith.constant 0 : index
    %c0_0 = arith.constant 0 : index
    %c0_1 = arith.constant 0 : index
    %0 = vector.load %arg1[%c0, %c0_0, %c0_1] : memref<1x8x32xf32, #tpu.memory_space<vmem>>, vector<1x8x32xf32>
    %1 = vector.shape_cast %0 : vector<1x8x32xf32> to vector<8x32xf32>
    %c0_2 = arith.constant 0 : index
    %c0_3 = arith.constant 0 : index
    %2 = vector.load %arg3[%c0_2, %c0_3] : memref<32x96xf32, #tpu.memory_space<vmem>>, vector<32x96xf32>
    %cst = arith.constant dense<0.000000e+00> : vector<8x96xf32>
    %3 = tpu.matmul %1, %2, %cst {dimension_numbers = #tpu.dot_dimension_numbers<[1], [0], [0], [1], [0, 0, 1, 1], [], []>} : vector<8x32xf32>, vector<32x96xf32>, vector<8x96xf32> -> vector<8x96xf32>
    %c0_4 = arith.constant 0 : index
    %c0_5 = arith.constant 0 : index
    %4 = vector.load %arg4[%c0_4, %c0_5] : memref<1x96xf32, #tpu.memory_space<vmem>>, vector<1x96xf32>
    %5 = vector.broadcast %4 : vector<1x96xf32> to vector<8x96xf32>
    %6 = arith.addf %3, %5 : vector<8x96xf32>
    %7 = vector.extract_strided_slice %6 {offsets = [0, 0], sizes = [8, 32], strides = [1, 1]} : vector<8x96xf32> to vector<8x32xf32>
    %8 = vector.extract_strided_slice %6 {offsets = [0, 32], sizes = [8, 32], strides = [1, 1]} : vector<8x96xf32> to vector<8x32xf32>
    %9 = vector.extract_strided_slice %6 {offsets = [0, 64], sizes = [8, 32], strides = [1, 1]} : vector<8x96xf32> to vector<8x32xf32>
    %c0_6 = arith.constant 0 : index
    %c0_7 = arith.constant 0 : index
    %c0_8 = arith.constant 0 : index
    %10 = vector.load %arg2[%c0_6, %c0_7, %c0_8] : memref<1x8x8xi32, #tpu.memory_space<vmem>>, vector<1x8x8xi32>
    %11 = vector.shape_cast %10 : vector<1x8x8xi32> to vector<8x8xi32>
    %c0_9 = arith.constant 0 : index
    %c0_10 = arith.constant 0 : index
    %12 = vector.load %arg5[%c0_9, %c0_10] : memref<32x32xf32, #tpu.memory_space<vmem>>, vector<32x32xf32>
    %c0_i32 = arith.constant 0 : i32
    %13 = vector.broadcast %c0_i32 : i32 to vector<8x8xi32>
    %14 = arith.cmpi ne, %11, %13 : vector<8x8xi32>
    %cst_11 = arith.constant 0.000000e+00 : f32
    %cst_12 = arith.constant -1.000000e+09 : f32
    %15 = vector.broadcast %cst_11 : f32 to vector<8x8xf32>
    %16 = vector.broadcast %cst_12 : f32 to vector<8x8xf32>
    %17 = arith.select %14, %15, %16 : vector<8x8xi1>, vector<8x8xf32>
    %cst_13 = arith.constant 0.000000e+00 : f32
    %18 = vector.broadcast %cst_13 : f32 to vector<8x32xf32>
    %19 = vector.extract_strided_slice %7 {offsets = [0, 0], sizes = [8, 8], strides = [1, 1]} : vector<8x32xf32> to vector<8x8xf32>
    %20 = vector.extract_strided_slice %8 {offsets = [0, 0], sizes = [8, 8], strides = [1, 1]} : vector<8x32xf32> to vector<8x8xf32>
    %21 = vector.extract_strided_slice %9 {offsets = [0, 0], sizes = [8, 8], strides = [1, 1]} : vector<8x32xf32> to vector<8x8xf32>
    %cst_14 = arith.constant dense<0.000000e+00> : vector<8x8xf32>
    %22 = tpu.matmul %19, %20, %cst_14 {dimension_numbers = #tpu.dot_dimension_numbers<[1], [1], [0], [0], [0, 0, 1, 0], [], []>} : vector<8x8xf32>, vector<8x8xf32>, vector<8x8xf32> -> vector<8x8xf32>
    %23 = arith.addf %22, %17 : vector<8x8xf32>
    %cst_15 = arith.constant dense<0xFF800000> : vector<8xf32>
    %24 = vector.multi_reduction <maximumf>, %23, %cst_15 [1] : vector<8x8xf32> to vector<8xf32>
    %25 = vector.shape_cast %24 : vector<8xf32> to vector<8x1xf32>
    %26 = vector.broadcast %25 : vector<8x1xf32> to vector<8x8xf32>
    %27 = arith.subf %23, %26 : vector<8x8xf32>
    %28 = math.exp %27 : vector<8x8xf32>
    %cst_16 = arith.constant dense<0.000000e+00> : vector<8xf32>
    %29 = vector.multi_reduction <add>, %28, %cst_16 [1] : vector<8x8xf32> to vector<8xf32>
    %30 = vector.shape_cast %29 : vector<8xf32> to vector<8x1xf32>
    %cst_17 = arith.constant dense<0.000000e+00> : vector<8x8xf32>
    %31 = tpu.matmul %28, %21, %cst_17 {dimension_numbers = #tpu.dot_dimension_numbers<[1], [0], [0], [1], [0, 0, 1, 1], [], []>} : vector<8x8xf32>, vector<8x8xf32>, vector<8x8xf32> -> vector<8x8xf32>
    %32 = vector.broadcast %30 : vector<8x1xf32> to vector<8x8xf32>
    %33 = arith.divf %31, %32 : vector<8x8xf32>
    %34 = vector.extract_strided_slice %12 {offsets = [0, 0], sizes = [8, 32], strides = [1, 1]} : vector<32x32xf32> to vector<8x32xf32>
    %cst_18 = arith.constant dense<0.000000e+00> : vector<8x32xf32>
    %35 = tpu.matmul %33, %34, %cst_18 {dimension_numbers = #tpu.dot_dimension_numbers<[1], [0], [0], [1], [0, 0, 1, 1], [], []>} : vector<8x8xf32>, vector<8x32xf32>, vector<8x32xf32> -> vector<8x32xf32>
    %36 = arith.addf %18, %35 : vector<8x32xf32>
    %37 = vector.extract_strided_slice %7 {offsets = [0, 8], sizes = [8, 8], strides = [1, 1]} : vector<8x32xf32> to vector<8x8xf32>
    %38 = vector.extract_strided_slice %8 {offsets = [0, 8], sizes = [8, 8], strides = [1, 1]} : vector<8x32xf32> to vector<8x8xf32>
    %39 = vector.extract_strided_slice %9 {offsets = [0, 8], sizes = [8, 8], strides = [1, 1]} : vector<8x32xf32> to vector<8x8xf32>
    %cst_19 = arith.constant dense<0.000000e+00> : vector<8x8xf32>
    %40 = tpu.matmul %37, %38, %cst_19 {dimension_numbers = #tpu.dot_dimension_numbers<[1], [1], [0], [0], [0, 0, 1, 0], [], []>} : vector<8x8xf32>, vector<8x8xf32>, vector<8x8xf32> -> vector<8x8xf32>
    %41 = arith.addf %40, %17 : vector<8x8xf32>
    %cst_20 = arith.constant dense<0xFF800000> : vector<8xf32>
    %42 = vector.multi_reduction <maximumf>, %41, %cst_20 [1] : vector<8x8xf32> to vector<8xf32>
    %43 = vector.shape_cast %42 : vector<8xf32> to vector<8x1xf32>
    %44 = vector.broadcast %43 : vector<8x1xf32> to vector<8x8xf32>
    %45 = arith.subf %41, %44 : vector<8x8xf32>
    %46 = math.exp %45 : vector<8x8xf32>
    %cst_21 = arith.constant dense<0.000000e+00> : vector<8xf32>
    %47 = vector.multi_reduction <add>, %46, %cst_21 [1] : vector<8x8xf32> to vector<8xf32>
    %48 = vector.shape_cast %47 : vector<8xf32> to vector<8x1xf32>
    %cst_22 = arith.constant dense<0.000000e+00> : vector<8x8xf32>
    %49 = tpu.matmul %46, %39, %cst_22 {dimension_numbers = #tpu.dot_dimension_numbers<[1], [0], [0], [1], [0, 0, 1, 1], [], []>} : vector<8x8xf32>, vector<8x8xf32>, vector<8x8xf32> -> vector<8x8xf32>
    %50 = vector.broadcast %48 : vector<8x1xf32> to vector<8x8xf32>
    %51 = arith.divf %49, %50 : vector<8x8xf32>
    %52 = vector.extract_strided_slice %12 {offsets = [8, 0], sizes = [8, 32], strides = [1, 1]} : vector<32x32xf32> to vector<8x32xf32>
    %cst_23 = arith.constant dense<0.000000e+00> : vector<8x32xf32>
    %53 = tpu.matmul %51, %52, %cst_23 {dimension_numbers = #tpu.dot_dimension_numbers<[1], [0], [0], [1], [0, 0, 1, 1], [], []>} : vector<8x8xf32>, vector<8x32xf32>, vector<8x32xf32> -> vector<8x32xf32>
    %54 = arith.addf %36, %53 : vector<8x32xf32>
    %55 = vector.extract_strided_slice %7 {offsets = [0, 16], sizes = [8, 8], strides = [1, 1]} : vector<8x32xf32> to vector<8x8xf32>
    %56 = vector.extract_strided_slice %8 {offsets = [0, 16], sizes = [8, 8], strides = [1, 1]} : vector<8x32xf32> to vector<8x8xf32>
    %57 = vector.extract_strided_slice %9 {offsets = [0, 16], sizes = [8, 8], strides = [1, 1]} : vector<8x32xf32> to vector<8x8xf32>
    %cst_24 = arith.constant dense<0.000000e+00> : vector<8x8xf32>
    %58 = tpu.matmul %55, %56, %cst_24 {dimension_numbers = #tpu.dot_dimension_numbers<[1], [1], [0], [0], [0, 0, 1, 0], [], []>} : vector<8x8xf32>, vector<8x8xf32>, vector<8x8xf32> -> vector<8x8xf32>
    %59 = arith.addf %58, %17 : vector<8x8xf32>
    %cst_25 = arith.constant dense<0xFF800000> : vector<8xf32>
    %60 = vector.multi_reduction <maximumf>, %59, %cst_25 [1] : vector<8x8xf32> to vector<8xf32>
    %61 = vector.shape_cast %60 : vector<8xf32> to vector<8x1xf32>
    %62 = vector.broadcast %61 : vector<8x1xf32> to vector<8x8xf32>
    %63 = arith.subf %59, %62 : vector<8x8xf32>
    %64 = math.exp %63 : vector<8x8xf32>
    %cst_26 = arith.constant dense<0.000000e+00> : vector<8xf32>
    %65 = vector.multi_reduction <add>, %64, %cst_26 [1] : vector<8x8xf32> to vector<8xf32>
    %66 = vector.shape_cast %65 : vector<8xf32> to vector<8x1xf32>
    %cst_27 = arith.constant dense<0.000000e+00> : vector<8x8xf32>
    %67 = tpu.matmul %64, %57, %cst_27 {dimension_numbers = #tpu.dot_dimension_numbers<[1], [0], [0], [1], [0, 0, 1, 1], [], []>} : vector<8x8xf32>, vector<8x8xf32>, vector<8x8xf32> -> vector<8x8xf32>
    %68 = vector.broadcast %66 : vector<8x1xf32> to vector<8x8xf32>
    %69 = arith.divf %67, %68 : vector<8x8xf32>
    %70 = vector.extract_strided_slice %12 {offsets = [16, 0], sizes = [8, 32], strides = [1, 1]} : vector<32x32xf32> to vector<8x32xf32>
    %cst_28 = arith.constant dense<0.000000e+00> : vector<8x32xf32>
    %71 = tpu.matmul %69, %70, %cst_28 {dimension_numbers = #tpu.dot_dimension_numbers<[1], [0], [0], [1], [0, 0, 1, 1], [], []>} : vector<8x8xf32>, vector<8x32xf32>, vector<8x32xf32> -> vector<8x32xf32>
    %72 = arith.addf %54, %71 : vector<8x32xf32>
    %73 = vector.extract_strided_slice %7 {offsets = [0, 24], sizes = [8, 8], strides = [1, 1]} : vector<8x32xf32> to vector<8x8xf32>
    %74 = vector.extract_strided_slice %8 {offsets = [0, 24], sizes = [8, 8], strides = [1, 1]} : vector<8x32xf32> to vector<8x8xf32>
    %75 = vector.extract_strided_slice %9 {offsets = [0, 24], sizes = [8, 8], strides = [1, 1]} : vector<8x32xf32> to vector<8x8xf32>
    %cst_29 = arith.constant dense<0.000000e+00> : vector<8x8xf32>
    %76 = tpu.matmul %73, %74, %cst_29 {dimension_numbers = #tpu.dot_dimension_numbers<[1], [1], [0], [0], [0, 0, 1, 0], [], []>} : vector<8x8xf32>, vector<8x8xf32>, vector<8x8xf32> -> vector<8x8xf32>
    %77 = arith.addf %76, %17 : vector<8x8xf32>
    %cst_30 = arith.constant dense<0xFF800000> : vector<8xf32>
    %78 = vector.multi_reduction <maximumf>, %77, %cst_30 [1] : vector<8x8xf32> to vector<8xf32>
    %79 = vector.shape_cast %78 : vector<8xf32> to vector<8x1xf32>
    %80 = vector.broadcast %79 : vector<8x1xf32> to vector<8x8xf32>
    %81 = arith.subf %77, %80 : vector<8x8xf32>
    %82 = math.exp %81 : vector<8x8xf32>
    %cst_31 = arith.constant dense<0.000000e+00> : vector<8xf32>
    %83 = vector.multi_reduction <add>, %82, %cst_31 [1] : vector<8x8xf32> to vector<8xf32>
    %84 = vector.shape_cast %83 : vector<8xf32> to vector<8x1xf32>
    %cst_32 = arith.constant dense<0.000000e+00> : vector<8x8xf32>
    %85 = tpu.matmul %82, %75, %cst_32 {dimension_numbers = #tpu.dot_dimension_numbers<[1], [0], [0], [1], [0, 0, 1, 1], [], []>} : vector<8x8xf32>, vector<8x8xf32>, vector<8x8xf32> -> vector<8x8xf32>
    %86 = vector.broadcast %84 : vector<8x1xf32> to vector<8x8xf32>
    %87 = arith.divf %85, %86 : vector<8x8xf32>
    %88 = vector.extract_strided_slice %12 {offsets = [24, 0], sizes = [8, 32], strides = [1, 1]} : vector<32x32xf32> to vector<8x32xf32>
    %cst_33 = arith.constant dense<0.000000e+00> : vector<8x32xf32>
    %89 = tpu.matmul %87, %88, %cst_33 {dimension_numbers = #tpu.dot_dimension_numbers<[1], [0], [0], [1], [0, 0, 1, 1], [], []>} : vector<8x8xf32>, vector<8x32xf32>, vector<8x32xf32> -> vector<8x32xf32>
    %90 = arith.addf %72, %89 : vector<8x32xf32>
    %c0_34 = arith.constant 0 : index
    %c0_35 = arith.constant 0 : index
    %91 = vector.load %arg6[%c0_34, %c0_35] : memref<1x32xf32, #tpu.memory_space<vmem>>, vector<1x32xf32>
    %92 = vector.broadcast %91 : vector<1x32xf32> to vector<8x32xf32>
    %93 = arith.addf %90, %92 : vector<8x32xf32>
    %94 = arith.addf %93, %1 : vector<8x32xf32>
    %c0_36 = arith.constant 0 : index
    %c0_37 = arith.constant 0 : index
    %95 = vector.load %arg7[%c0_36, %c0_37] : memref<1x32xf32, #tpu.memory_space<vmem>>, vector<1x32xf32>
    %c0_38 = arith.constant 0 : index
    %c0_39 = arith.constant 0 : index
    %96 = vector.load %arg8[%c0_38, %c0_39] : memref<1x32xf32, #tpu.memory_space<vmem>>, vector<1x32xf32>
    %cst_40 = arith.constant dense<0.000000e+00> : vector<8xf32>
    %97 = vector.multi_reduction <add>, %94, %cst_40 [1] : vector<8x32xf32> to vector<8xf32>
    %98 = vector.shape_cast %97 : vector<8xf32> to vector<8x1xf32>
    %cst_41 = arith.constant 3.200000e+01 : f32
    %99 = vector.broadcast %cst_41 : f32 to vector<8x1xf32>
    %100 = arith.divf %98, %99 : vector<8x1xf32>
    %101 = vector.broadcast %100 : vector<8x1xf32> to vector<8x32xf32>
    %102 = arith.subf %94, %101 : vector<8x32xf32>
    %103 = arith.mulf %102, %102 : vector<8x32xf32>
    %cst_42 = arith.constant dense<0.000000e+00> : vector<8xf32>
    %104 = vector.multi_reduction <add>, %103, %cst_42 [1] : vector<8x32xf32> to vector<8xf32>
    %105 = vector.shape_cast %104 : vector<8xf32> to vector<8x1xf32>
    %cst_43 = arith.constant 3.200000e+01 : f32
    %106 = vector.broadcast %cst_43 : f32 to vector<8x1xf32>
    %107 = arith.divf %105, %106 : vector<8x1xf32>
    %108 = vector.broadcast %100 : vector<8x1xf32> to vector<8x32xf32>
    %109 = arith.subf %94, %108 : vector<8x32xf32>
    %cst_44 = arith.constant 9.99999974E-6 : f32
    %110 = vector.broadcast %cst_44 : f32 to vector<8x1xf32>
    %111 = arith.addf %107, %110 : vector<8x1xf32>
    %112 = math.rsqrt %111 : vector<8x1xf32>
    %113 = vector.broadcast %112 : vector<8x1xf32> to vector<8x32xf32>
    %114 = arith.mulf %109, %113 : vector<8x32xf32>
    %115 = vector.broadcast %95 : vector<1x32xf32> to vector<8x32xf32>
    %116 = arith.mulf %114, %115 : vector<8x32xf32>
    %117 = vector.broadcast %96 : vector<1x32xf32> to vector<8x32xf32>
    %118 = arith.addf %116, %117 : vector<8x32xf32>
    %c0_45 = arith.constant 0 : index
    %c0_46 = arith.constant 0 : index
    %c0_47 = arith.constant 0 : index
    %119 = vector.load %arg9[%c0_45, %c0_46, %c0_47] : memref<1x8x32xf32, #tpu.memory_space<vmem>>, vector<1x8x32xf32>
    %120 = vector.shape_cast %119 : vector<1x8x32xf32> to vector<8x32xf32>
    %121 = vector.shape_cast %118 : vector<8x32xf32> to vector<1x8x32xf32>
    tpu.vector_store %arg9[%c0_45, %c0_46, %c0_47], %121 {strides = array<i32>} : memref<1x8x32xf32, #tpu.memory_space<vmem>>, vector<1x8x32xf32>,
    return
  }
  func.func @transform_0(%arg0: i32) -> (i32, i32, i32) {
    %c0_i32 = arith.constant 0 : i32
    %c0_i32_0 = arith.constant 0 : i32
    %c0_i32_1 = arith.constant 0 : i32
    return %arg0, %c0_i32, %c0_i32_0 : i32, i32, i32
  }
  func.func @transform_1(%arg0: i32) -> (i32, i32, i32) {
    %c0_i32 = arith.constant 0 : i32
    %c0_i32_0 = arith.constant 0 : i32
    %c0_i32_1 = arith.constant 0 : i32
    return %arg0, %c0_i32, %c0_i32_0 : i32, i32, i32
  }
  func.func @transform_2(%arg0: i32) -> (i32, i32) {
    %c0_i32 = arith.constant 0 : i32
    %c0_i32_0 = arith.constant 0 : i32
    %c0_i32_1 = arith.constant 0 : i32
    return %c0_i32, %c0_i32_0 : i32, i32
  }
  func.func @transform_3(%arg0: i32) -> (i32, i32) {
    %c0_i32 = arith.constant 0 : i32
    %c0_i32_0 = arith.constant 0 : i32
    %c0_i32_1 = arith.constant 0 : i32
    return %c0_i32, %c0_i32_0 : i32, i32
  }
  func.func @transform_4(%arg0: i32) -> (i32, i32) {
    %c0_i32 = arith.constant 0 : i32
    %c0_i32_0 = arith.constant 0 : i32
    %c0_i32_1 = arith.constant 0 : i32
    return %c0_i32, %c0_i32_0 : i32, i32
  }
  func.func @transform_5(%arg0: i32) -> (i32, i32) {
    %c0_i32 = arith.constant 0 : i32
    %c0_i32_0 = arith.constant 0 : i32
    %c0_i32_1 = arith.constant 0 : i32
    return %c0_i32, %c0_i32_0 : i32, i32
  }
  func.func @transform_6(%arg0: i32) -> (i32, i32) {
    %c0_i32 = arith.constant 0 : i32
    %c0_i32_0 = arith.constant 0 : i32
    %c0_i32_1 = arith.constant 0 : i32
    return %c0_i32, %c0_i32_0 : i32, i32
  }
  func.func @transform_7(%arg0: i32) -> (i32, i32) {
    %c0_i32 = arith.constant 0 : i32
    %c0_i32_0 = arith.constant 0 : i32
    %c0_i32_1 = arith.constant 0 : i32
    return %c0_i32, %c0_i32_0 : i32, i32
  }
  func.func @transform_8(%arg0: i32) -> (i32, i32, i32) {
    %c0_i32 = arith.constant 0 : i32
    %c0_i32_0 = arith.constant 0 : i32
    %c0_i32_1 = arith.constant 0 : i32
    return %arg0, %c0_i32, %c0_i32_0 : i32, i32, i32
  }
}

module attributes {stable_mosaic.version = 11 : i64} {
  func.func @_cross_attn_kernel(%arg0: i32, %arg1: memref<1x8x32xf32, #tpu.memory_space<vmem>>, %arg2: memref<1x8x32xf32, #tpu.memory_space<vmem>>, %arg3: memref<1x1x8xi32, #tpu.memory_space<vmem>>, %arg4: memref<32x32xf32, #tpu.memory_space<vmem>>, %arg5: memref<1x32xf32, #tpu.memory_space<vmem>>, %arg6: memref<32x64xf32, #tpu.memory_space<vmem>>, %arg7: memref<1x64xf32, #tpu.memory_space<vmem>>, %arg8: memref<32x32xf32, #tpu.memory_space<vmem>>, %arg9: memref<1x32xf32, #tpu.memory_space<vmem>>, %arg10: memref<1x32xf32, #tpu.memory_space<vmem>>, %arg11: memref<1x32xf32, #tpu.memory_space<vmem>>, %arg12: memref<1x8x32xf32, #tpu.memory_space<vmem>>) attributes {dimension_semantics = [#tpu.dimension_semantics<parallel>], iteration_bounds = array<i64: 2>, scalar_prefetch = 0 : i64, scratch_operands = 0 : i64, tpu.core_type = #tpu.core_type<tc>, window_params = [{transform_indices = @transform_0, window_bounds = array<i64: 1, 8, 32>}, {transform_indices = @transform_1, window_bounds = array<i64: 1, 8, 32>}, {transform_indices = @transform_2, window_bounds = array<i64: 1, 1, 8>}, {pipeline_mode = #tpu.pipeline_mode<synchronous>, transform_indices = @transform_3, window_bounds = array<i64: 32, 32>}, {pipeline_mode = #tpu.pipeline_mode<synchronous>, transform_indices = @transform_4, window_bounds = array<i64: 1, 32>}, {pipeline_mode = #tpu.pipeline_mode<synchronous>, transform_indices = @transform_5, window_bounds = array<i64: 32, 64>}, {pipeline_mode = #tpu.pipeline_mode<synchronous>, transform_indices = @transform_6, window_bounds = array<i64: 1, 64>}, {pipeline_mode = #tpu.pipeline_mode<synchronous>, transform_indices = @transform_7, window_bounds = array<i64: 32, 32>}, {pipeline_mode = #tpu.pipeline_mode<synchronous>, transform_indices = @transform_8, window_bounds = array<i64: 1, 32>}, {pipeline_mode = #tpu.pipeline_mode<synchronous>, transform_indices = @transform_9, window_bounds = array<i64: 1, 32>}, {pipeline_mode = #tpu.pipeline_mode<synchronous>, transform_indices = @transform_10, window_bounds = array<i64: 1, 32>}, {transform_indices = @transform_11, window_bounds = array<i64: 1, 8, 32>}]} {
    %c0 = arith.constant 0 : index
    %c0_0 = arith.constant 0 : index
    %c0_1 = arith.constant 0 : index
    %0 = vector.load %arg1[%c0, %c0_0, %c0_1] : memref<1x8x32xf32, #tpu.memory_space<vmem>>, vector<1x8x32xf32>
    %1 = vector.shape_cast %0 : vector<1x8x32xf32> to vector<8x32xf32>
    %c0_2 = arith.constant 0 : index
    %c0_3 = arith.constant 0 : index
    %c0_4 = arith.constant 0 : index
    %2 = vector.load %arg2[%c0_2, %c0_3, %c0_4] : memref<1x8x32xf32, #tpu.memory_space<vmem>>, vector<1x8x32xf32>
    %3 = vector.shape_cast %2 : vector<1x8x32xf32> to vector<8x32xf32>
    %c0_5 = arith.constant 0 : index
    %c0_6 = arith.constant 0 : index
    %4 = vector.load %arg4[%c0_5, %c0_6] : memref<32x32xf32, #tpu.memory_space<vmem>>, vector<32x32xf32>
    %cst = arith.constant dense<0.000000e+00> : vector<8x32xf32>
    %5 = tpu.matmul %1, %4, %cst {dimension_numbers = #tpu.dot_dimension_numbers<[1], [0], [0], [1], [0, 0, 1, 1], [], []>} : vector<8x32xf32>, vector<32x32xf32>, vector<8x32xf32> -> vector<8x32xf32>
    %c0_7 = arith.constant 0 : index
    %c0_8 = arith.constant 0 : index
    %6 = vector.load %arg5[%c0_7, %c0_8] : memref<1x32xf32, #tpu.memory_space<vmem>>, vector<1x32xf32>
    %7 = vector.broadcast %6 : vector<1x32xf32> to vector<8x32xf32>
    %8 = arith.addf %5, %7 : vector<8x32xf32>
    %c0_9 = arith.constant 0 : index
    %c0_10 = arith.constant 0 : index
    %9 = vector.load %arg6[%c0_9, %c0_10] : memref<32x64xf32, #tpu.memory_space<vmem>>, vector<32x64xf32>
    %cst_11 = arith.constant dense<0.000000e+00> : vector<8x64xf32>
    %10 = tpu.matmul %3, %9, %cst_11 {dimension_numbers = #tpu.dot_dimension_numbers<[1], [0], [0], [1], [0, 0, 1, 1], [], []>} : vector<8x32xf32>, vector<32x64xf32>, vector<8x64xf32> -> vector<8x64xf32>
    %c0_12 = arith.constant 0 : index
    %c0_13 = arith.constant 0 : index
    %11 = vector.load %arg7[%c0_12, %c0_13] : memref<1x64xf32, #tpu.memory_space<vmem>>, vector<1x64xf32>
    %12 = vector.broadcast %11 : vector<1x64xf32> to vector<8x64xf32>
    %13 = arith.addf %10, %12 : vector<8x64xf32>
    %14 = vector.extract_strided_slice %13 {offsets = [0, 0], sizes = [8, 32], strides = [1, 1]} : vector<8x64xf32> to vector<8x32xf32>
    %15 = vector.extract_strided_slice %13 {offsets = [0, 32], sizes = [8, 32], strides = [1, 1]} : vector<8x64xf32> to vector<8x32xf32>
    %c0_14 = arith.constant 0 : index
    %c0_15 = arith.constant 0 : index
    %c0_16 = arith.constant 0 : index
    %16 = vector.load %arg3[%c0_14, %c0_15, %c0_16] : memref<1x1x8xi32, #tpu.memory_space<vmem>>, vector<1x1x8xi32>
    %17 = vector.shape_cast %16 : vector<1x1x8xi32> to vector<1x8xi32>
    %c0_17 = arith.constant 0 : index
    %c0_18 = arith.constant 0 : index
    %18 = vector.load %arg8[%c0_17, %c0_18] : memref<32x32xf32, #tpu.memory_space<vmem>>, vector<32x32xf32>
    %c0_i32 = arith.constant 0 : i32
    %19 = vector.broadcast %c0_i32 : i32 to vector<1x8xi32>
    %20 = arith.cmpi ne, %17, %19 : vector<1x8xi32>
    %cst_19 = arith.constant 0.000000e+00 : f32
    %cst_20 = arith.constant -1.000000e+09 : f32
    %21 = vector.broadcast %cst_19 : f32 to vector<1x8xf32>
    %22 = vector.broadcast %cst_20 : f32 to vector<1x8xf32>
    %23 = arith.select %20, %21, %22 : vector<1x8xi1>, vector<1x8xf32>
    %cst_21 = arith.constant 0.000000e+00 : f32
    %24 = vector.broadcast %cst_21 : f32 to vector<8x32xf32>
    %25 = vector.extract_strided_slice %8 {offsets = [0, 0], sizes = [8, 8], strides = [1, 1]} : vector<8x32xf32> to vector<8x8xf32>
    %26 = vector.extract_strided_slice %14 {offsets = [0, 0], sizes = [8, 8], strides = [1, 1]} : vector<8x32xf32> to vector<8x8xf32>
    %27 = vector.extract_strided_slice %15 {offsets = [0, 0], sizes = [8, 8], strides = [1, 1]} : vector<8x32xf32> to vector<8x8xf32>
    %cst_22 = arith.constant dense<0.000000e+00> : vector<8x8xf32>
    %28 = tpu.matmul %25, %26, %cst_22 {dimension_numbers = #tpu.dot_dimension_numbers<[1], [1], [0], [0], [0, 0, 1, 0], [], []>} : vector<8x8xf32>, vector<8x8xf32>, vector<8x8xf32> -> vector<8x8xf32>
    %29 = vector.broadcast %23 : vector<1x8xf32> to vector<8x8xf32>
    %30 = arith.addf %28, %29 : vector<8x8xf32>
    %cst_23 = arith.constant dense<0xFF800000> : vector<8xf32>
    %31 = vector.multi_reduction <maximumf>, %30, %cst_23 [1] : vector<8x8xf32> to vector<8xf32>
    %32 = vector.shape_cast %31 : vector<8xf32> to vector<8x1xf32>
    %33 = vector.broadcast %32 : vector<8x1xf32> to vector<8x8xf32>
    %34 = arith.subf %30, %33 : vector<8x8xf32>
    %35 = math.exp %34 : vector<8x8xf32>
    %cst_24 = arith.constant dense<0.000000e+00> : vector<8xf32>
    %36 = vector.multi_reduction <add>, %35, %cst_24 [1] : vector<8x8xf32> to vector<8xf32>
    %37 = vector.shape_cast %36 : vector<8xf32> to vector<8x1xf32>
    %cst_25 = arith.constant dense<0.000000e+00> : vector<8x8xf32>
    %38 = tpu.matmul %35, %27, %cst_25 {dimension_numbers = #tpu.dot_dimension_numbers<[1], [0], [0], [1], [0, 0, 1, 1], [], []>} : vector<8x8xf32>, vector<8x8xf32>, vector<8x8xf32> -> vector<8x8xf32>
    %39 = vector.broadcast %37 : vector<8x1xf32> to vector<8x8xf32>
    %40 = arith.divf %38, %39 : vector<8x8xf32>
    %41 = vector.extract_strided_slice %18 {offsets = [0, 0], sizes = [8, 32], strides = [1, 1]} : vector<32x32xf32> to vector<8x32xf32>
    %cst_26 = arith.constant dense<0.000000e+00> : vector<8x32xf32>
    %42 = tpu.matmul %40, %41, %cst_26 {dimension_numbers = #tpu.dot_dimension_numbers<[1], [0], [0], [1], [0, 0, 1, 1], [], []>} : vector<8x8xf32>, vector<8x32xf32>, vector<8x32xf32> -> vector<8x32xf32>
    %43 = arith.addf %24, %42 : vector<8x32xf32>
    %44 = vector.extract_strided_slice %8 {offsets = [0, 8], sizes = [8, 8], strides = [1, 1]} : vector<8x32xf32> to vector<8x8xf32>
    %45 = vector.extract_strided_slice %14 {offsets = [0, 8], sizes = [8, 8], strides = [1, 1]} : vector<8x32xf32> to vector<8x8xf32>
    %46 = vector.extract_strided_slice %15 {offsets = [0, 8], sizes = [8, 8], strides = [1, 1]} : vector<8x32xf32> to vector<8x8xf32>
    %cst_27 = arith.constant dense<0.000000e+00> : vector<8x8xf32>
    %47 = tpu.matmul %44, %45, %cst_27 {dimension_numbers = #tpu.dot_dimension_numbers<[1], [1], [0], [0], [0, 0, 1, 0], [], []>} : vector<8x8xf32>, vector<8x8xf32>, vector<8x8xf32> -> vector<8x8xf32>
    %48 = vector.broadcast %23 : vector<1x8xf32> to vector<8x8xf32>
    %49 = arith.addf %47, %48 : vector<8x8xf32>
    %cst_28 = arith.constant dense<0xFF800000> : vector<8xf32>
    %50 = vector.multi_reduction <maximumf>, %49, %cst_28 [1] : vector<8x8xf32> to vector<8xf32>
    %51 = vector.shape_cast %50 : vector<8xf32> to vector<8x1xf32>
    %52 = vector.broadcast %51 : vector<8x1xf32> to vector<8x8xf32>
    %53 = arith.subf %49, %52 : vector<8x8xf32>
    %54 = math.exp %53 : vector<8x8xf32>
    %cst_29 = arith.constant dense<0.000000e+00> : vector<8xf32>
    %55 = vector.multi_reduction <add>, %54, %cst_29 [1] : vector<8x8xf32> to vector<8xf32>
    %56 = vector.shape_cast %55 : vector<8xf32> to vector<8x1xf32>
    %cst_30 = arith.constant dense<0.000000e+00> : vector<8x8xf32>
    %57 = tpu.matmul %54, %46, %cst_30 {dimension_numbers = #tpu.dot_dimension_numbers<[1], [0], [0], [1], [0, 0, 1, 1], [], []>} : vector<8x8xf32>, vector<8x8xf32>, vector<8x8xf32> -> vector<8x8xf32>
    %58 = vector.broadcast %56 : vector<8x1xf32> to vector<8x8xf32>
    %59 = arith.divf %57, %58 : vector<8x8xf32>
    %60 = vector.extract_strided_slice %18 {offsets = [8, 0], sizes = [8, 32], strides = [1, 1]} : vector<32x32xf32> to vector<8x32xf32>
    %cst_31 = arith.constant dense<0.000000e+00> : vector<8x32xf32>
    %61 = tpu.matmul %59, %60, %cst_31 {dimension_numbers = #tpu.dot_dimension_numbers<[1], [0], [0], [1], [0, 0, 1, 1], [], []>} : vector<8x8xf32>, vector<8x32xf32>, vector<8x32xf32> -> vector<8x32xf32>
    %62 = arith.addf %43, %61 : vector<8x32xf32>
    %63 = vector.extract_strided_slice %8 {offsets = [0, 16], sizes = [8, 8], strides = [1, 1]} : vector<8x32xf32> to vector<8x8xf32>
    %64 = vector.extract_strided_slice %14 {offsets = [0, 16], sizes = [8, 8], strides = [1, 1]} : vector<8x32xf32> to vector<8x8xf32>
    %65 = vector.extract_strided_slice %15 {offsets = [0, 16], sizes = [8, 8], strides = [1, 1]} : vector<8x32xf32> to vector<8x8xf32>
    %cst_32 = arith.constant dense<0.000000e+00> : vector<8x8xf32>
    %66 = tpu.matmul %63, %64, %cst_32 {dimension_numbers = #tpu.dot_dimension_numbers<[1], [1], [0], [0], [0, 0, 1, 0], [], []>} : vector<8x8xf32>, vector<8x8xf32>, vector<8x8xf32> -> vector<8x8xf32>
    %67 = vector.broadcast %23 : vector<1x8xf32> to vector<8x8xf32>
    %68 = arith.addf %66, %67 : vector<8x8xf32>
    %cst_33 = arith.constant dense<0xFF800000> : vector<8xf32>
    %69 = vector.multi_reduction <maximumf>, %68, %cst_33 [1] : vector<8x8xf32> to vector<8xf32>
    %70 = vector.shape_cast %69 : vector<8xf32> to vector<8x1xf32>
    %71 = vector.broadcast %70 : vector<8x1xf32> to vector<8x8xf32>
    %72 = arith.subf %68, %71 : vector<8x8xf32>
    %73 = math.exp %72 : vector<8x8xf32>
    %cst_34 = arith.constant dense<0.000000e+00> : vector<8xf32>
    %74 = vector.multi_reduction <add>, %73, %cst_34 [1] : vector<8x8xf32> to vector<8xf32>
    %75 = vector.shape_cast %74 : vector<8xf32> to vector<8x1xf32>
    %cst_35 = arith.constant dense<0.000000e+00> : vector<8x8xf32>
    %76 = tpu.matmul %73, %65, %cst_35 {dimension_numbers = #tpu.dot_dimension_numbers<[1], [0], [0], [1], [0, 0, 1, 1], [], []>} : vector<8x8xf32>, vector<8x8xf32>, vector<8x8xf32> -> vector<8x8xf32>
    %77 = vector.broadcast %75 : vector<8x1xf32> to vector<8x8xf32>
    %78 = arith.divf %76, %77 : vector<8x8xf32>
    %79 = vector.extract_strided_slice %18 {offsets = [16, 0], sizes = [8, 32], strides = [1, 1]} : vector<32x32xf32> to vector<8x32xf32>
    %cst_36 = arith.constant dense<0.000000e+00> : vector<8x32xf32>
    %80 = tpu.matmul %78, %79, %cst_36 {dimension_numbers = #tpu.dot_dimension_numbers<[1], [0], [0], [1], [0, 0, 1, 1], [], []>} : vector<8x8xf32>, vector<8x32xf32>, vector<8x32xf32> -> vector<8x32xf32>
    %81 = arith.addf %62, %80 : vector<8x32xf32>
    %82 = vector.extract_strided_slice %8 {offsets = [0, 24], sizes = [8, 8], strides = [1, 1]} : vector<8x32xf32> to vector<8x8xf32>
    %83 = vector.extract_strided_slice %14 {offsets = [0, 24], sizes = [8, 8], strides = [1, 1]} : vector<8x32xf32> to vector<8x8xf32>
    %84 = vector.extract_strided_slice %15 {offsets = [0, 24], sizes = [8, 8], strides = [1, 1]} : vector<8x32xf32> to vector<8x8xf32>
    %cst_37 = arith.constant dense<0.000000e+00> : vector<8x8xf32>
    %85 = tpu.matmul %82, %83, %cst_37 {dimension_numbers = #tpu.dot_dimension_numbers<[1], [1], [0], [0], [0, 0, 1, 0], [], []>} : vector<8x8xf32>, vector<8x8xf32>, vector<8x8xf32> -> vector<8x8xf32>
    %86 = vector.broadcast %23 : vector<1x8xf32> to vector<8x8xf32>
    %87 = arith.addf %85, %86 : vector<8x8xf32>
    %cst_38 = arith.constant dense<0xFF800000> : vector<8xf32>
    %88 = vector.multi_reduction <maximumf>, %87, %cst_38 [1] : vector<8x8xf32> to vector<8xf32>
    %89 = vector.shape_cast %88 : vector<8xf32> to vector<8x1xf32>
    %90 = vector.broadcast %89 : vector<8x1xf32> to vector<8x8xf32>
    %91 = arith.subf %87, %90 : vector<8x8xf32>
    %92 = math.exp %91 : vector<8x8xf32>
    %cst_39 = arith.constant dense<0.000000e+00> : vector<8xf32>
    %93 = vector.multi_reduction <add>, %92, %cst_39 [1] : vector<8x8xf32> to vector<8xf32>
    %94 = vector.shape_cast %93 : vector<8xf32> to vector<8x1xf32>
    %cst_40 = arith.constant dense<0.000000e+00> : vector<8x8xf32>
    %95 = tpu.matmul %92, %84, %cst_40 {dimension_numbers = #tpu.dot_dimension_numbers<[1], [0], [0], [1], [0, 0, 1, 1], [], []>} : vector<8x8xf32>, vector<8x8xf32>, vector<8x8xf32> -> vector<8x8xf32>
    %96 = vector.broadcast %94 : vector<8x1xf32> to vector<8x8xf32>
    %97 = arith.divf %95, %96 : vector<8x8xf32>
    %98 = vector.extract_strided_slice %18 {offsets = [24, 0], sizes = [8, 32], strides = [1, 1]} : vector<32x32xf32> to vector<8x32xf32>
    %cst_41 = arith.constant dense<0.000000e+00> : vector<8x32xf32>
    %99 = tpu.matmul %97, %98, %cst_41 {dimension_numbers = #tpu.dot_dimension_numbers<[1], [0], [0], [1], [0, 0, 1, 1], [], []>} : vector<8x8xf32>, vector<8x32xf32>, vector<8x32xf32> -> vector<8x32xf32>
    %100 = arith.addf %81, %99 : vector<8x32xf32>
    %c0_42 = arith.constant 0 : index
    %c0_43 = arith.constant 0 : index
    %101 = vector.load %arg9[%c0_42, %c0_43] : memref<1x32xf32, #tpu.memory_space<vmem>>, vector<1x32xf32>
    %102 = vector.broadcast %101 : vector<1x32xf32> to vector<8x32xf32>
    %103 = arith.addf %100, %102 : vector<8x32xf32>
    %104 = arith.addf %103, %1 : vector<8x32xf32>
    %c0_44 = arith.constant 0 : index
    %c0_45 = arith.constant 0 : index
    %105 = vector.load %arg10[%c0_44, %c0_45] : memref<1x32xf32, #tpu.memory_space<vmem>>, vector<1x32xf32>
    %c0_46 = arith.constant 0 : index
    %c0_47 = arith.constant 0 : index
    %106 = vector.load %arg11[%c0_46, %c0_47] : memref<1x32xf32, #tpu.memory_space<vmem>>, vector<1x32xf32>
    %cst_48 = arith.constant dense<0.000000e+00> : vector<8xf32>
    %107 = vector.multi_reduction <add>, %104, %cst_48 [1] : vector<8x32xf32> to vector<8xf32>
    %108 = vector.shape_cast %107 : vector<8xf32> to vector<8x1xf32>
    %cst_49 = arith.constant 3.200000e+01 : f32
    %109 = vector.broadcast %cst_49 : f32 to vector<8x1xf32>
    %110 = arith.divf %108, %109 : vector<8x1xf32>
    %111 = vector.broadcast %110 : vector<8x1xf32> to vector<8x32xf32>
    %112 = arith.subf %104, %111 : vector<8x32xf32>
    %113 = arith.mulf %112, %112 : vector<8x32xf32>
    %cst_50 = arith.constant dense<0.000000e+00> : vector<8xf32>
    %114 = vector.multi_reduction <add>, %113, %cst_50 [1] : vector<8x32xf32> to vector<8xf32>
    %115 = vector.shape_cast %114 : vector<8xf32> to vector<8x1xf32>
    %cst_51 = arith.constant 3.200000e+01 : f32
    %116 = vector.broadcast %cst_51 : f32 to vector<8x1xf32>
    %117 = arith.divf %115, %116 : vector<8x1xf32>
    %118 = vector.broadcast %110 : vector<8x1xf32> to vector<8x32xf32>
    %119 = arith.subf %104, %118 : vector<8x32xf32>
    %cst_52 = arith.constant 9.99999974E-6 : f32
    %120 = vector.broadcast %cst_52 : f32 to vector<8x1xf32>
    %121 = arith.addf %117, %120 : vector<8x1xf32>
    %122 = math.rsqrt %121 : vector<8x1xf32>
    %123 = vector.broadcast %122 : vector<8x1xf32> to vector<8x32xf32>
    %124 = arith.mulf %119, %123 : vector<8x32xf32>
    %125 = vector.broadcast %105 : vector<1x32xf32> to vector<8x32xf32>
    %126 = arith.mulf %124, %125 : vector<8x32xf32>
    %127 = vector.broadcast %106 : vector<1x32xf32> to vector<8x32xf32>
    %128 = arith.addf %126, %127 : vector<8x32xf32>
    %c0_53 = arith.constant 0 : index
    %c0_54 = arith.constant 0 : index
    %c0_55 = arith.constant 0 : index
    %129 = vector.load %arg12[%c0_53, %c0_54, %c0_55] : memref<1x8x32xf32, #tpu.memory_space<vmem>>, vector<1x8x32xf32>
    %130 = vector.shape_cast %129 : vector<1x8x32xf32> to vector<8x32xf32>
    %131 = vector.shape_cast %128 : vector<8x32xf32> to vector<1x8x32xf32>
    tpu.vector_store %arg12[%c0_53, %c0_54, %c0_55], %131 {strides = array<i32>} : memref<1x8x32xf32, #tpu.memory_space<vmem>>, vector<1x8x32xf32>,
    return
  }
  func.func @transform_0(%arg0: i32) -> (i32, i32, i32) {
    %c0_i32 = arith.constant 0 : i32
    %c0_i32_0 = arith.constant 0 : i32
    %c0_i32_1 = arith.constant 0 : i32
    return %arg0, %c0_i32, %c0_i32_0 : i32, i32, i32
  }
  func.func @transform_1(%arg0: i32) -> (i32, i32, i32) {
    %c0_i32 = arith.constant 0 : i32
    %c0_i32_0 = arith.constant 0 : i32
    %c0_i32_1 = arith.constant 0 : i32
    return %arg0, %c0_i32, %c0_i32_0 : i32, i32, i32
  }
  func.func @transform_2(%arg0: i32) -> (i32, i32, i32) {
    %c0_i32 = arith.constant 0 : i32
    %c0_i32_0 = arith.constant 0 : i32
    %c0_i32_1 = arith.constant 0 : i32
    return %arg0, %c0_i32, %c0_i32_0 : i32, i32, i32
  }
  func.func @transform_3(%arg0: i32) -> (i32, i32) {
    %c0_i32 = arith.constant 0 : i32
    %c0_i32_0 = arith.constant 0 : i32
    %c0_i32_1 = arith.constant 0 : i32
    return %c0_i32, %c0_i32_0 : i32, i32
  }
  func.func @transform_4(%arg0: i32) -> (i32, i32) {
    %c0_i32 = arith.constant 0 : i32
    %c0_i32_0 = arith.constant 0 : i32
    %c0_i32_1 = arith.constant 0 : i32
    return %c0_i32, %c0_i32_0 : i32, i32
  }
  func.func @transform_5(%arg0: i32) -> (i32, i32) {
    %c0_i32 = arith.constant 0 : i32
    %c0_i32_0 = arith.constant 0 : i32
    %c0_i32_1 = arith.constant 0 : i32
    return %c0_i32, %c0_i32_0 : i32, i32
  }
  func.func @transform_6(%arg0: i32) -> (i32, i32) {
    %c0_i32 = arith.constant 0 : i32
    %c0_i32_0 = arith.constant 0 : i32
    %c0_i32_1 = arith.constant 0 : i32
    return %c0_i32, %c0_i32_0 : i32, i32
  }
  func.func @transform_7(%arg0: i32) -> (i32, i32) {
    %c0_i32 = arith.constant 0 : i32
    %c0_i32_0 = arith.constant 0 : i32
    %c0_i32_1 = arith.constant 0 : i32
    return %c0_i32, %c0_i32_0 : i32, i32
  }
  func.func @transform_8(%arg0: i32) -> (i32, i32) {
    %c0_i32 = arith.constant 0 : i32
    %c0_i32_0 = arith.constant 0 : i32
    %c0_i32_1 = arith.constant 0 : i32
    return %c0_i32, %c0_i32_0 : i32, i32
  }
  func.func @transform_9(%arg0: i32) -> (i32, i32) {
    %c0_i32 = arith.constant 0 : i32
    %c0_i32_0 = arith.constant 0 : i32
    %c0_i32_1 = arith.constant 0 : i32
    return %c0_i32, %c0_i32_0 : i32, i32
  }
  func.func @transform_10(%arg0: i32) -> (i32, i32) {
    %c0_i32 = arith.constant 0 : i32
    %c0_i32_0 = arith.constant 0 : i32
    %c0_i32_1 = arith.constant 0 : i32
    return %c0_i32, %c0_i32_0 : i32, i32
  }
  func.func @transform_11(%arg0: i32) -> (i32, i32, i32) {
    %c0_i32 = arith.constant 0 : i32
    %c0_i32_0 = arith.constant 0 : i32
    %c0_i32_1 = arith.constant 0 : i32
    return %arg0, %c0_i32, %c0_i32_0 : i32, i32, i32
  }
}

module attributes {stable_mosaic.version = 11 : i64} {
  func.func @_ffn_kernel(%arg0: i32, %arg1: memref<16x32xf32, #tpu.memory_space<vmem>>, %arg2: memref<32x64xf32, #tpu.memory_space<vmem>>, %arg3: memref<1x64xf32, #tpu.memory_space<vmem>>, %arg4: memref<64x32xf32, #tpu.memory_space<vmem>>, %arg5: memref<1x32xf32, #tpu.memory_space<vmem>>, %arg6: memref<1x32xf32, #tpu.memory_space<vmem>>, %arg7: memref<1x32xf32, #tpu.memory_space<vmem>>, %arg8: memref<16x32xf32, #tpu.memory_space<vmem>>) attributes {dimension_semantics = [#tpu.dimension_semantics<parallel>], iteration_bounds = array<i64: 1>, scalar_prefetch = 0 : i64, scratch_operands = 0 : i64, tpu.core_type = #tpu.core_type<tc>, window_params = [{transform_indices = @transform_0, window_bounds = array<i64: 16, 32>}, {pipeline_mode = #tpu.pipeline_mode<synchronous>, transform_indices = @transform_1, window_bounds = array<i64: 32, 64>}, {pipeline_mode = #tpu.pipeline_mode<synchronous>, transform_indices = @transform_2, window_bounds = array<i64: 1, 64>}, {pipeline_mode = #tpu.pipeline_mode<synchronous>, transform_indices = @transform_3, window_bounds = array<i64: 64, 32>}, {pipeline_mode = #tpu.pipeline_mode<synchronous>, transform_indices = @transform_4, window_bounds = array<i64: 1, 32>}, {pipeline_mode = #tpu.pipeline_mode<synchronous>, transform_indices = @transform_5, window_bounds = array<i64: 1, 32>}, {pipeline_mode = #tpu.pipeline_mode<synchronous>, transform_indices = @transform_6, window_bounds = array<i64: 1, 32>}, {transform_indices = @transform_7, window_bounds = array<i64: 16, 32>}]} {
    %c0 = arith.constant 0 : index
    %c0_0 = arith.constant 0 : index
    %0 = vector.load %arg1[%c0, %c0_0] : memref<16x32xf32, #tpu.memory_space<vmem>>, vector<16x32xf32>
    %c0_1 = arith.constant 0 : index
    %c0_2 = arith.constant 0 : index
    %1 = vector.load %arg2[%c0_1, %c0_2] : memref<32x64xf32, #tpu.memory_space<vmem>>, vector<32x64xf32>
    %cst = arith.constant dense<0.000000e+00> : vector<16x64xf32>
    %2 = tpu.matmul %0, %1, %cst {dimension_numbers = #tpu.dot_dimension_numbers<[1], [0], [0], [1], [0, 0, 1, 1], [], []>} : vector<16x32xf32>, vector<32x64xf32>, vector<16x64xf32> -> vector<16x64xf32>
    %c0_3 = arith.constant 0 : index
    %c0_4 = arith.constant 0 : index
    %3 = vector.load %arg3[%c0_3, %c0_4] : memref<1x64xf32, #tpu.memory_space<vmem>>, vector<1x64xf32>
    %4 = vector.broadcast %3 : vector<1x64xf32> to vector<16x64xf32>
    %5 = arith.addf %2, %4 : vector<16x64xf32>
    %cst_5 = arith.constant 0.000000e+00 : f32
    %6 = vector.broadcast %cst_5 : f32 to vector<16x64xf32>
    %7 = arith.maximumf %5, %6 : vector<16x64xf32>
    %c0_6 = arith.constant 0 : index
    %c0_7 = arith.constant 0 : index
    %8 = vector.load %arg4[%c0_6, %c0_7] : memref<64x32xf32, #tpu.memory_space<vmem>>, vector<64x32xf32>
    %cst_8 = arith.constant dense<0.000000e+00> : vector<16x32xf32>
    %9 = tpu.matmul %7, %8, %cst_8 {dimension_numbers = #tpu.dot_dimension_numbers<[1], [0], [0], [1], [0, 0, 1, 1], [], []>} : vector<16x64xf32>, vector<64x32xf32>, vector<16x32xf32> -> vector<16x32xf32>
    %c0_9 = arith.constant 0 : index
    %c0_10 = arith.constant 0 : index
    %10 = vector.load %arg5[%c0_9, %c0_10] : memref<1x32xf32, #tpu.memory_space<vmem>>, vector<1x32xf32>
    %11 = vector.broadcast %10 : vector<1x32xf32> to vector<16x32xf32>
    %12 = arith.addf %9, %11 : vector<16x32xf32>
    %13 = arith.addf %12, %0 : vector<16x32xf32>
    %c0_11 = arith.constant 0 : index
    %c0_12 = arith.constant 0 : index
    %14 = vector.load %arg6[%c0_11, %c0_12] : memref<1x32xf32, #tpu.memory_space<vmem>>, vector<1x32xf32>
    %c0_13 = arith.constant 0 : index
    %c0_14 = arith.constant 0 : index
    %15 = vector.load %arg7[%c0_13, %c0_14] : memref<1x32xf32, #tpu.memory_space<vmem>>, vector<1x32xf32>
    %cst_15 = arith.constant dense<0.000000e+00> : vector<16xf32>
    %16 = vector.multi_reduction <add>, %13, %cst_15 [1] : vector<16x32xf32> to vector<16xf32>
    %17 = vector.shape_cast %16 : vector<16xf32> to vector<16x1xf32>
    %cst_16 = arith.constant 3.200000e+01 : f32
    %18 = vector.broadcast %cst_16 : f32 to vector<16x1xf32>
    %19 = arith.divf %17, %18 : vector<16x1xf32>
    %20 = vector.broadcast %19 : vector<16x1xf32> to vector<16x32xf32>
    %21 = arith.subf %13, %20 : vector<16x32xf32>
    %22 = arith.mulf %21, %21 : vector<16x32xf32>
    %cst_17 = arith.constant dense<0.000000e+00> : vector<16xf32>
    %23 = vector.multi_reduction <add>, %22, %cst_17 [1] : vector<16x32xf32> to vector<16xf32>
    %24 = vector.shape_cast %23 : vector<16xf32> to vector<16x1xf32>
    %cst_18 = arith.constant 3.200000e+01 : f32
    %25 = vector.broadcast %cst_18 : f32 to vector<16x1xf32>
    %26 = arith.divf %24, %25 : vector<16x1xf32>
    %27 = vector.broadcast %19 : vector<16x1xf32> to vector<16x32xf32>
    %28 = arith.subf %13, %27 : vector<16x32xf32>
    %cst_19 = arith.constant 9.99999974E-6 : f32
    %29 = vector.broadcast %cst_19 : f32 to vector<16x1xf32>
    %30 = arith.addf %26, %29 : vector<16x1xf32>
    %31 = math.rsqrt %30 : vector<16x1xf32>
    %32 = vector.broadcast %31 : vector<16x1xf32> to vector<16x32xf32>
    %33 = arith.mulf %28, %32 : vector<16x32xf32>
    %34 = vector.broadcast %14 : vector<1x32xf32> to vector<16x32xf32>
    %35 = arith.mulf %33, %34 : vector<16x32xf32>
    %36 = vector.broadcast %15 : vector<1x32xf32> to vector<16x32xf32>
    %37 = arith.addf %35, %36 : vector<16x32xf32>
    %c0_20 = arith.constant 0 : index
    %c0_21 = arith.constant 0 : index
    %38 = vector.load %arg8[%c0_20, %c0_21] : memref<16x32xf32, #tpu.memory_space<vmem>>, vector<16x32xf32>
    tpu.vector_store %arg8[%c0_20, %c0_21], %37 {strides = array<i32>} : memref<16x32xf32, #tpu.memory_space<vmem>>, vector<16x32xf32>,
    return
  }
  func.func @transform_0(%arg0: i32) -> (i32, i32) {
    %c0_i32 = arith.constant 0 : i32
    %c0_i32_0 = arith.constant 0 : i32
    return %arg0, %c0_i32 : i32, i32
  }
  func.func @transform_1(%arg0: i32) -> (i32, i32) {
    %c0_i32 = arith.constant 0 : i32
    %c0_i32_0 = arith.constant 0 : i32
    %c0_i32_1 = arith.constant 0 : i32
    return %c0_i32, %c0_i32_0 : i32, i32
  }
  func.func @transform_2(%arg0: i32) -> (i32, i32) {
    %c0_i32 = arith.constant 0 : i32
    %c0_i32_0 = arith.constant 0 : i32
    %c0_i32_1 = arith.constant 0 : i32
    return %c0_i32, %c0_i32_0 : i32, i32
  }
  func.func @transform_3(%arg0: i32) -> (i32, i32) {
    %c0_i32 = arith.constant 0 : i32
    %c0_i32_0 = arith.constant 0 : i32
    %c0_i32_1 = arith.constant 0 : i32
    return %c0_i32, %c0_i32_0 : i32, i32
  }
  func.func @transform_4(%arg0: i32) -> (i32, i32) {
    %c0_i32 = arith.constant 0 : i32
    %c0_i32_0 = arith.constant 0 : i32
    %c0_i32_1 = arith.constant 0 : i32
    return %c0_i32, %c0_i32_0 : i32, i32
  }
  func.func @transform_5(%arg0: i32) -> (i32, i32) {
    %c0_i32 = arith.constant 0 : i32
    %c0_i32_0 = arith.constant 0 : i32
    %c0_i32_1 = arith.constant 0 : i32
    return %c0_i32, %c0_i32_0 : i32, i32
  }
  func.func @transform_6(%arg0: i32) -> (i32, i32) {
    %c0_i32 = arith.constant 0 : i32
    %c0_i32_0 = arith.constant 0 : i32
    %c0_i32_1 = arith.constant 0 : i32
    return %c0_i32, %c0_i32_0 : i32, i32
  }
  func.func @transform_7(%arg0: i32) -> (i32, i32) {
    %c0_i32 = arith.constant 0 : i32
    %c0_i32_0 = arith.constant 0 : i32
    return %arg0, %c0_i32 : i32, i32
  }
}

module attributes {stable_mosaic.version = 11 : i64} {
  func.func @_matmul_bias_kernel(%arg0: i32, %arg1: i32, %arg2: i32, %arg3: memref<16x32xf32, #tpu.memory_space<vmem>>, %arg4: memref<32x50xf32, #tpu.memory_space<vmem>>, %arg5: memref<1x50xf32, #tpu.memory_space<vmem>>, %arg6: memref<16x50xf32, #tpu.memory_space<vmem>>, %arg7: memref<16x50xf32, #tpu.memory_space<vmem>>) attributes {dimension_semantics = [#tpu.dimension_semantics<parallel>, #tpu.dimension_semantics<parallel>, #tpu.dimension_semantics<arbitrary>], iteration_bounds = array<i64: 1, 1, 1>, scalar_prefetch = 0 : i64, scratch_operands = 1 : i64, tpu.core_type = #tpu.core_type<tc>, window_params = [{transform_indices = @transform_0, window_bounds = array<i64: 16, 32>}, {transform_indices = @transform_1, window_bounds = array<i64: 32, 50>}, {transform_indices = @transform_2, window_bounds = array<i64: 1, 50>}, {transform_indices = @transform_3, window_bounds = array<i64: 16, 50>}]} {
    %c0_i32 = arith.constant 0 : i32
    %0 = arith.cmpi eq, %arg2, %c0_i32 : i32
    %1 = arith.extui %0 : i1 to i32
    %c0_i32_0 = arith.constant 0 : i32
    %2 = arith.cmpi ne, %1, %c0_i32_0 : i32
    scf.if %2 {
      %cst_10 = arith.constant 0.000000e+00 : f32
      %12 = vector.broadcast %cst_10 : f32 to vector<16x50xf32>
      %c0_11 = arith.constant 0 : index
      %c0_12 = arith.constant 0 : index
      %13 = vector.load %arg7[%c0_11, %c0_12] : memref<16x50xf32, #tpu.memory_space<vmem>>, vector<16x50xf32>
      tpu.vector_store %arg7[%c0_11, %c0_12], %12 {strides = array<i32>} : memref<16x50xf32, #tpu.memory_space<vmem>>, vector<16x50xf32>,
    } else {
    }
    %c0 = arith.constant 0 : index
    %c0_1 = arith.constant 0 : index
    %3 = vector.load %arg7[%c0, %c0_1] : memref<16x50xf32, #tpu.memory_space<vmem>>, vector<16x50xf32>
    %c0_2 = arith.constant 0 : index
    %c0_3 = arith.constant 0 : index
    %4 = vector.load %arg3[%c0_2, %c0_3] : memref<16x32xf32, #tpu.memory_space<vmem>>, vector<16x32xf32>
    %c0_4 = arith.constant 0 : index
    %c0_5 = arith.constant 0 : index
    %5 = vector.load %arg4[%c0_4, %c0_5] : memref<32x50xf32, #tpu.memory_space<vmem>>, vector<32x50xf32>
    %cst = arith.constant dense<0.000000e+00> : vector<16x50xf32>
    %6 = tpu.matmul %4, %5, %cst {dimension_numbers = #tpu.dot_dimension_numbers<[1], [0], [0], [1], [0, 0, 1, 1], [], []>} : vector<16x32xf32>, vector<32x50xf32>, vector<16x50xf32> -> vector<16x50xf32>
    %7 = arith.addf %3, %6 : vector<16x50xf32>
    %c0_6 = arith.constant 0 : index
    %c0_7 = arith.constant 0 : index
    %8 = vector.load %arg7[%c0_6, %c0_7] : memref<16x50xf32, #tpu.memory_space<vmem>>, vector<16x50xf32>
    tpu.vector_store %arg7[%c0_6, %c0_7], %7 {strides = array<i32>} : memref<16x50xf32, #tpu.memory_space<vmem>>, vector<16x50xf32>,
    %c0_i32_8 = arith.constant 0 : i32
    %9 = arith.cmpi eq, %arg2, %c0_i32_8 : i32
    %10 = arith.extui %9 : i1 to i32
    %c0_i32_9 = arith.constant 0 : i32
    %11 = arith.cmpi ne, %10, %c0_i32_9 : i32
    scf.if %11 {
      %c0_10 = arith.constant 0 : index
      %c0_11 = arith.constant 0 : index
      %12 = vector.load %arg7[%c0_10, %c0_11] : memref<16x50xf32, #tpu.memory_space<vmem>>, vector<16x50xf32>
      %c0_12 = arith.constant 0 : index
      %c0_13 = arith.constant 0 : index
      %13 = vector.load %arg5[%c0_12, %c0_13] : memref<1x50xf32, #tpu.memory_space<vmem>>, vector<1x50xf32>
      %14 = vector.broadcast %13 : vector<1x50xf32> to vector<16x50xf32>
      %15 = arith.addf %12, %14 : vector<16x50xf32>
      %c0_14 = arith.constant 0 : index
      %c0_15 = arith.constant 0 : index
      %16 = vector.load %arg6[%c0_14, %c0_15] : memref<16x50xf32, #tpu.memory_space<vmem>>, vector<16x50xf32>
      tpu.vector_store %arg6[%c0_14, %c0_15], %15 {strides = array<i32>} : memref<16x50xf32, #tpu.memory_space<vmem>>, vector<16x50xf32>,
    } else {
    }
    return
  }
  func.func @transform_0(%arg0: i32, %arg1: i32, %arg2: i32) -> (i32, i32) {
    %c0_i32 = arith.constant 0 : i32
    return %arg0, %arg2 : i32, i32
  }
  func.func @transform_1(%arg0: i32, %arg1: i32, %arg2: i32) -> (i32, i32) {
    %c0_i32 = arith.constant 0 : i32
    return %arg2, %arg1 : i32, i32
  }
  func.func @transform_2(%arg0: i32, %arg1: i32, %arg2: i32) -> (i32, i32) {
    %c0_i32 = arith.constant 0 : i32
    %c0_i32_0 = arith.constant 0 : i32
    return %c0_i32, %arg1 : i32, i32
  }
  func.func @transform_3(%arg0: i32, %arg1: i32, %arg2: i32) -> (i32, i32) {
    %c0_i32 = arith.constant 0 : i32
    return %arg0, %arg1 : i32, i32
  }
}

</mosaic_0001>

<bundles_post_ra>
// kernel: decoder_forward.13
= control target key start
LH: loop header
LB: loop body
LE: loop exit
PB: predicated region body
PF: predicated region fallthrough
CT: control target
= control target key end

     0   :  { %vm30_vm0 = vcmask 261120   ;;  %vm19_vm1 = vcmask 408576   ;;  %v205_v6 = vmov 0.0   ;;  %s270_s0 = inlined_call_operand.vmem [shape: f32[16,32], index: 0, kind: input, shape index: {}]   ;;  %s271_s1 = inlined_call_operand.vmem [shape: f32[32,50], index: 1, kind: input, shape index: {}]   ;;  %s272_s2 = inlined_call_operand.vmem [shape: f32[1,50], index: 2, kind: input, shape index: {}]   ;;  %s273_s3 = inlined_call_operand.hbm [shape: f32[16,50], index: 3, kind: output, shape index: {}]  }
   0x1   :  { %v26_v0 = vld [vmem:[%s271_s1] sm:$0xff]  ;;  %v27_v1 = vld [vmem:[%s271_s1 + $0x8] sm:$0xff]  ;;  %v28_v2 = vld [vmem:[%s271_s1 + $0x10] sm:$0xff]  ;;  %21 = vst.msk [vmem:[#allocation2 + $0x8] sm:$0xff] %vm19_vm1, %v205_v6 }
   0x2   :  { %v169_v3 = vpack.c.bf16 %v27_v1, %v26_v0  ;;  %v29_v4 = vld [vmem:[%s271_s1 + $0x18] sm:$0xff]  ;;  %v24_v5 = vld [vmem:[%s270_s0] sm:$0xff]  ;;  %20 = vst.msk [vmem:[#allocation2] sm:$0xff] %vm19_vm1, %v205_v6 }
   0x3   :  { %v173_v7 = vpack.c.bf16 %v29_v4, %v28_v2  ;;  %166 = vmatprep.mubr.msk.f32.mxu0 %vm30_vm0, %v24_v5 }
   0x4   :  { %8 = vsyncpa [#allocation4], 0  ;;  %170 = vmatprep.subr.bf16.mxu0 %v169_v3  ;;  %v25_v8 = vld [vmem:[%s270_s0 + $0x8] sm:$0xff]  ;;  %v151_v15 = vld [vmem:[%s272_s2] ss:$0 sm:$0xff]  ;;  %s206_s25 = smov [#allocation3]  }
   0x5   :  { %172 = vmatpush3.bf16.msra.mxu0 %v169_v3  ;;  %s138_s26 = sshll.u32 %s206_s25, 4  ;;  %s139_s26 = int_to_ptr.vmem [resolvable:$true] %s138_s26 }
   0x6   :  { %174 = vmatprep.subr.bf16.mxu0 %v173_v7  ;;  %s181_s0 = scalar_lea.vmem %s139_s26, 256  ;;  %p186_p1 = scmp.lt.s32.totalorder %s139_s26, %s139_s26 }
   0x7   :  { %p182_p0 = scmp.ne.s32.totalorder %s139_s26, %s181_s0  ;;  %p187_p2 = scmp.lt.s32.totalorder %s181_s0, %s181_s0 }
   0x8   :  { %v23_v9 = vld [vmem:[#allocation2 + $0x8] sm:$0xff] }
   0x9   :  { %176 = vmatpush3.bf16.msra.mxu0 %v173_v7  ;;  %v22_v10 = vld [vmem:[#allocation2] sm:$0xff]  ;;  %p188_p3 = por %p187_p2, %p186_p1 }
   0xb   :  { %p189_p4 = pnand %p188_p3, %p182_p0 }
   0xc   :  { %167 = vmatmul.mubr.msk.f32.vlgmr.msra.gmra.mrb[0].mxu0 %vm30_vm0, %v25_v8 }
  0xdf   :  { %v168_v11 = vpop.f32.mrb[0].mxu0 }
  0xe0   :  { %v113_v12 = vadd.f32 %v168_v11, %v23_v9  ;;  %v103_v13 = vpop.f32.mrb[1].mxu0 }
  0xe1   :  { %v112_v14 = vadd.f32 %v103_v13, %v22_v10 }
  0xe2   :  { %116 = vst.msk [vmem:[#allocation2 + $0x8] sm:$0xff] %vm19_vm1, %v113_v12 }
  0xe3   :  { %115 = vst.msk [vmem:[#allocation2] sm:$0xff] %vm19_vm1, %v112_v14 }
  0xe9   :  { %v121_v16 = vld [vmem:[#allocation2 + $0x8] sm:$0xff] }
  0xea   :  { %v120_v17 = vld [vmem:[#allocation2] sm:$0xff]  ;;  %v130_v18 = vadd.f32 %v151_v15, %v121_v16 }
  0xeb   :  { %v129_v19 = vadd.f32 %v151_v15, %v120_v17 }
  0xec   :  { %132 = vst.msk [vmem:[#allocation3 + $0x8] sm:$0xff] %vm19_vm1, %v130_v18 }
  0xed   :  { %131 = vst.msk [vmem:[#allocation3] sm:$0xff] %vm19_vm1, %v129_v19 }
  0xee   :  { %192 = shalt.err (!%p189_p4)
}
  0xef   :  { %s193_s28 = scalar_lea.hbm %s273_s3, 256 }
  0xf0   :  { %p194_p5 = scmp.ne.s32.totalorder %s273_s3, %s193_s28  ;;  %p197_p6 = scmp.lt.u32.totalorder %s193_s28, %s273_s3 }
  0xf2   :  { %p199_p7 = pnand %p197_p6, %p194_p5 }
  0xf4   :  { %202 = shalt.err (!%p199_p7)
}
  0xf5   :  { %s207_s6 = smov 128   ;;  %s208_s7 = smov 8  }
  0xf6   :  { %144 = dma.vmem_to_hbm [thread:$0]  %s139_s26, 256, %s273_s3, [#allocation4], %s207_s6, %s207_s6, %s208_s7  }
  0xf7   :  { %203 = dma.done.wait [#allocation4], 256  }
  0xf8   :  { %204 = vsyncadd [#allocation4], 4294967040 }
  0xf9   :  { %148 = vsyncpa [#allocation4], 1 }

// kernel: decoder_forward.9
= control target key start
LH: loop header
LB: loop body
LE: loop exit
PB: predicated region body
PF: predicated region fallthrough
CT: control target
= control target key end

     0   :  { %vm39_vm0 = vcmask 261120   ;;  %vm138_vm1 = vcmask 523264   ;;  %s463_s1 = inlined_call_operand.vmem [shape: f32[32,64], index: 1, kind: input, shape index: {}]   ;;  %s464_s0 = inlined_call_operand.vmem [shape: f32[16,32], index: 0, kind: input, shape index: {}]   ;;  %s465_s3 = inlined_call_operand.vmem [shape: f32[64,32], index: 3, kind: input, shape index: {}]   ;;  %s466_s2 = inlined_call_operand.vmem [shape: f32[1,64], index: 2, kind: input, shape index: {}]   ;;  %s467_s4 = inlined_call_operand.vmem [shape: f32[1,32], index: 4, kind: input, shape index: {}]   ;;  %s468_s5 = inlined_call_operand.vmem [shape: f32[1,32], index: 5, kind: input, shape index: {}]   ;;  %s469_s6 = inlined_call_operand.vmem [shape: f32[1,32], index: 6, kind: input, shape index: {}]   ;;  %s470_s7 = inlined_call_operand.vmem [shape: f32[16,32], index: 7, kind: output, shape index: {}]  }
   0x1   :  { %v28_v0 = vld [vmem:[%s463_s1] sm:$0xff]  ;;  %v29_v1 = vld [vmem:[%s463_s1 + $0x8] sm:$0xff]  ;;  %v30_v2 = vld [vmem:[%s463_s1 + $0x10] sm:$0xff] }
   0x2   :  { %v327_v3 = vpack.c.bf16 %v29_v1, %v28_v0  ;;  %v31_v4 = vld [vmem:[%s463_s1 + $0x18] sm:$0xff]  ;;  %v26_v5 = vld [vmem:[%s464_s0] sm:$0xff]  ;;  %v124_v8 = vld [vmem:[%s465_s3 + $0x8] sm:$0xff] }
   0x3   :  { %v331_v6 = vpack.c.bf16 %v31_v4, %v30_v2  ;;  %305 = vmatprep.mubr.msk.f32.mxu0 %vm39_vm0, %v26_v5  ;;  %v123_v7 = vld [vmem:[%s465_s3] sm:$0xff]  ;;  %v125_v9 = vld [vmem:[%s465_s3 + $0x10] sm:$0xff]  ;;  %v126_v11 = vld [vmem:[%s465_s3 + $0x18] sm:$0xff] }
   0x4   :  { %328 = vmatprep.subr.bf16.mxu0 %v327_v3  ;;  %v335_v10 = vpack.c.bf16 %v124_v8, %v123_v7  ;;  %v339_v12 = vpack.c.bf16 %v126_v11, %v125_v9  ;;  %v127_v13 = vld [vmem:[%s465_s3 + $0x20] sm:$0xff]  ;;  %v128_v14 = vld [vmem:[%s465_s3 + $0x28] sm:$0xff]  ;;  %v129_v17 = vld [vmem:[%s465_s3 + $0x30] sm:$0xff] }
   0x5   :  { %330 = vmatpush3.bf16.msra.mxu0 %v327_v3  ;;  %v343_v15 = vpack.c.bf16 %v128_v14, %v127_v13  ;;  %v27_v16 = vld [vmem:[%s464_s0 + $0x8] sm:$0xff]  ;;  %v130_v18 = vld [vmem:[%s465_s3 + $0x38] sm:$0xff]  ;;  %v273_v20 = vld [vmem:[%s466_s2] ss:$0 sm:$0xff] }
   0x6   :  { %332 = vmatprep.subr.bf16.mxu0 %v331_v6  ;;  %336 = vmatprep.subr.bf16.mxu1 %v335_v10  ;;  %v347_v19 = vpack.c.bf16 %v130_v18, %v129_v17  ;;  %v276_v27 = vld [vmem:[%s467_s4] ss:$0 sm:$0xff] }
   0x7   :  { %338 = vmatpush3.bf16.msra.mxu1 %v335_v10  ;;  %v279_v53 = vld [vmem:[%s468_s5] ss:$0 sm:$0xff] }
   0x8   :  { %340 = vmatprep.subr.bf16.mxu1 %v339_v12  ;;  %v280_v55 = vld [vmem:[%s469_s6] ss:$0 sm:$0xff] }
   0x9   :  { %334 = vmatpush3.bf16.msra.mxu0 %v331_v6 }
   0xb   :  { %342 = vmatpush3.bf16.msra.mxu1 %v339_v12 }
   0xc   :  { %306 = vmatmul.mubr.msk.f32.vlgmr.msra.gmra.mrb[0].mxu0 %vm39_vm0, %v27_v16  ;;  %344 = vmatprep.subr.bf16.mxu1 %v343_v15 }
   0xf   :  { %346 = vmatpush3.bf16.msra.mxu1 %v343_v15 }
  0x10   :  { %348 = vmatprep.subr.bf16.mxu1 %v347_v19 }
  0x13   :  { %350 = vmatpush3.bf16.msra.mxu1 %v347_v19 }
  0xdf   :  { %v307_v21 = vpop.f32.mrb[0].mxu0 }
  0xe0   :  { %v118_v22 = vadd.f32 %v307_v21, %v273_v20  ;;  %v112_v23 = vpop.f32.mrb[1].mxu0 }
  0xe1   :  { %v113_v24 = vadd.f32 %v273_v20, %v112_v23 }
  0xe2   :  { %v122_v26 = vmax.f32 %v118_v22, 0.0 }
  0xe3   :  { %v121_v25 = vmax.f32 %v113_v24, 0.0 }
  0xe5   :  { %324 = vmatprep.mubr.msk.f32.mxu1 %vm138_vm1, %v121_v25 }
  0xe6   :  { %325 = vmatmul.mubr.msk.f32.vlgmr.msra.gmra.mrb[0].mxu1 %vm138_vm1, %v122_v26 }
 0x1b9   :  { %v326_v28 = vpop.f32.mrb[0].mxu1 }
 0x1ba   :  { %v211_v29 = vpop.f32.mrb[1].mxu1  ;;  %v217_v30 = vadd.f32 %v326_v28, %v276_v27 }
 0x1bb   :  { %v212_v31 = vadd.f32 %v276_v27, %v211_v29 }
 0x1bc   :  { %v221_v34 = vadd.f32 %v217_v30, %v27_v16 }
 0x1bd   :  { %v220_v32 = vadd.f32 %v212_v31, %v26_v5 }
 0x1be   :  { %v227_v35 = vsel %vm39_vm0, %v221_v34, 0.0 }
 0x1bf   :  { %v224_v33 = vsel %vm39_vm0, %v220_v32, 0.0 }
 0x1c0   :  { %225 = vadd.xlane.f32.xlu0 %v224_v33 }
 0x1c4   :  { %228 = vadd.xlane.f32.xlu0 %v227_v35 }
 0x24d   :  { %v226_v36 = vpop.xlane.xlu0 %225 }
 0x24e   :  { %v231_v37 = vmul.f32 0.03125, %v226_v36 }
 0x250   :  { %v233_v38 = vsub.f32 %v220_v32, %v231_v37 }
 0x251   :  { %v229_v39 = vpop.xlane.xlu0 %228 }
 0x252   :  { %v232_v40 = vmul.f32 0.03125, %v229_v39  ;;  %v235_v41 = vmul.f32 %v233_v38, %v233_v38 }
 0x254   :  { %v234_v42 = vsub.f32 %v221_v34, %v232_v40  ;;  %v237_v43 = vsel %vm39_vm0, %v235_v41, 0.0 }
 0x255   :  { %238 = vadd.xlane.f32.xlu1 %v237_v43 }
 0x256   :  { %v236_v44 = vmul.f32 %v234_v42, %v234_v42 }
 0x258   :  { %v240_v45 = vsel %vm39_vm0, %v236_v44, 0.0 }
 0x259   :  { %241 = vadd.xlane.f32.xlu1 %v240_v45 }
 0x2e2   :  { %v239_v46 = vpop.xlane.xlu1 %238 }
 0x2e3   :  { %v243_v47 = vmul.f32 0.03125, %v239_v46 }
 0x2e5   :  { %v245_v48 = vadd.f32 1e-05, %v243_v47 }
 0x2e6   :  { %v242_v49 = vpop.xlane.xlu1 %241 }
 0x2e7   :  { %351 = vrsqrt.f32 %v245_v48  ;;  %v244_v50 = vmul.f32 0.03125, %v242_v49 }
 0x2e9   :  { %v246_v51 = vadd.f32 1e-05, %v244_v50 }
 0x2eb   :  { %353 = vrsqrt.f32 %v246_v51 }
 0x2f1   :  { %v352_v52 = vpop.eup %351 }
 0x2f2   :  { %v249_v54 = vmul.f32 %v352_v52, %v233_v38 }
 0x2f4   :  { %v257_v56 = vmul.f32 %v279_v53, %v249_v54 }
 0x2f5   :  { %v354_v57 = vpop.eup %353 }
 0x2f6   :  { %v265_v58 = vadd.f32 %v280_v55, %v257_v56  ;;  %v250_v59 = vmul.f32 %v354_v57, %v234_v42 }
 0x2f8   :  { %267 = vst.msk [vmem:[%s470_s7] sm:$0xff] %vm39_vm0, %v265_v58  ;;  %v258_v60 = vmul.f32 %v279_v53, %v250_v59 }
 0x2fa   :  { %v266_v61 = vadd.f32 %v280_v55, %v258_v60 }
 0x2fc   :  { %268 = vst.msk [vmem:[%s470_s7 + $0x8] sm:$0xff] %vm39_vm0, %v266_v61 }

// kernel: decoder_forward.7
= control target key start
LH: loop header
LB: loop body
LE: loop exit
PB: predicated region body
PF: predicated region fallthrough
CT: control target
= control target key end

     0   :  { %s1716_s27 = smov 0   ;;  %s1867_s0 = inlined_call_operand.vmem [shape: f32[2,8,32], index: 0, kind: input, shape index: {}]   ;;  %s1868_s1 = inlined_call_operand.vmem [shape: s32[2,8,8], index: 1, kind: input, shape index: {}]   ;;  %s1869_s2 = inlined_call_operand.vmem [shape: f32[32,96], index: 2, kind: input, shape index: {}]   ;;  %s1870_s3 = inlined_call_operand.vmem [shape: f32[1,96], index: 3, kind: input, shape index: {}]   ;;  %s1871_s4 = inlined_call_operand.vmem [shape: f32[32,32], index: 4, kind: input, shape index: {}]   ;;  %s1872_s5 = inlined_call_operand.vmem [shape: f32[1,32], index: 5, kind: input, shape index: {}]   ;;  %s1873_s6 = inlined_call_operand.vmem [shape: f32[1,32], index: 6, kind: input, shape index: {}]   ;;  %s1874_s7 = inlined_call_operand.vmem [shape: f32[1,32], index: 7, kind: input, shape index: {}]   ;;  %s1875_s8 = inlined_call_operand.vmem [shape: f32[2,8,32], index: 8, kind: output, shape index: {}]  }
   0x1 LB: > { %s1470_s28 = sadd.s32 4294967295, %s1654_s27   ;;  %p1474_p0 = scmp.ge.s32.totalorder %s1654_s27, 1  ;;  %s1654_s27 = sphi %s1716_s27, %s18_s27  }
   0x2   : > { %p270_p1 = scmp.lt.s32.totalorder %s1654_s27, 3 }
   0x4   : > { %p271_p2 = pnand %p1474_p0, %p270_p1 }
   0x5   : > { %v319_v0 = vld [vmem:[%s1869_s2] sm:$0xff] (!%p271_p2)  ;;  %v320_v1 = vld [vmem:[%s1869_s2 + $0x8] sm:$0xff] (!%p271_p2)  ;;  %v321_v2 = vld [vmem:[%s1869_s2 + $0x10] sm:$0xff] (!%p271_p2)  ;;  %v1656_v3 = vmov (!%p271_p2), 0.0|0.0   ;;  %vm1657_vm0 = vmmov (!%p271_p2), 0   ;;  %v1658_v6 = vmov (!%p271_p2), 0.0  }
   0x6   : > { %274 = sbr.rel (%p271_p2) target bundleno = 2437 (0x985), region = 52  ;;  %1601 = vmatprep.subr.bf16.mxu0 (!%p271_p2), %v1656_v3  ;;  %v1602_v4 = vpack.c.bf16 (!%p271_p2), %v320_v1, %v319_v0  ;;  %v322_v5 = vld [vmem:[%s1869_s2 + $0x18] sm:$0xff] (!%p271_p2)  ;;  %1538 = vmatprep.mubr.msk.f32.mxu0 (!%p271_p2), %vm1657_vm0, %v1658_v6  ;;  %p306_p3 = scmp.lt.s32.totalorder (!%p271_p2), %s1470_s28, 1  ;;  %vm330_vm1 = vcmask (!%p271_p2), 261120   ;;  %v1478_v9 = vld [vmem:[%s1870_s3] ss:$0 sm:$0xff] (!%p271_p2) }
   0x7   : > { %1541 = vmatprep.subr.mxu1 (!%p271_p2), %v1658_v6  ;;  %1543 = vmatprep.mubr.msk.f32.mxu1 (!%p271_p2), %vm1657_vm0, %v1658_v6  ;;  %v1605_v7 = vpack.c.bf16 (!%p271_p2), %v322_v5, %v321_v2  ;;  %s1659_s21 = smov (!%p271_p2), 120   ;;  %s1660_s22 = smov (!%p271_p2), 96   ;;  %vm414_vm2 = vcmask (!%p271_p2), 64512   ;;  %v1662_v17 = vmov (!%p271_p2), -1e+09   ;;  %v406_v39 = vld [vmem:[%s1871_s4 + $0x8] sm:$0xff] (!%p271_p2) }
   0x8   : > { %1603 = vmatpush3.bf16.msra.mxu0 (!%p271_p2), %v1602_v4  ;;  %s1661_s23 = smov (!%p271_p2), 88   ;;  %s1664_s29 = smov (!%p271_p2), 64   ;;  %v405_v40 = vld [vmem:[%s1871_s4] sm:$0xff] (!%p271_p2) }
   0x9   : > { %1604 = vmatprep.subr.bf16.mxu0 (!%p271_p2), %v1656_v3  ;;  %s1665_s30 = smov (!%p271_p2), 80   ;;  %s1666_s9 = smov (!%p271_p2), 112  }
   0xa   : > { %s1667_s10 = smov (!%p271_p2), 48   ;;  %s1668_s11 = smov (!%p271_p2), 72  }
   0xb   : > { %s1669_s17 = smov (!%p271_p2), 104   ;;  %s1670_s20 = smov (!%p271_p2), 40  }
   0xc   : > { %1606 = vmatpush3.bf16.msra.mxu0 (!%p271_p2), %v1605_v7  ;;  %v407_v7 = vld [vmem:[%s1871_s4 + $0x10] sm:$0xff] (!%p271_p2) }
   0xd   : > { %s1877_s28 = smov (!%p306_p3, %s1470_s28), 1  ;;  %1551 = vmatprep.subr.mxu0 %v1658_v6 }
   0xe   : > { %s1741_s15 = sshll.u32 %s1877_s28, 3  ;;  %s1663_s28 = smov 56  }
   0xf   : > { %s309_s18 = scalar_lea.vmem %s1867_s0, %s1741_s15  ;;  %s313_s26 = scalar_lea.vmem %s1868_s1, %s1741_s15 }
  0x10   : > { %v1747_v8 = vld [vmem:[%s309_s18] sm:$0xff] }
  0x11   : > { %1539 = vmatmul.mubr.msk.f32.vlgmr.msra.gmra.mrb[0].mxu0 %vm330_vm1, %v1747_v8  ;;  %v404_v16 = vld [vmem:[%s313_s26] sm:$0xff] }
  0x12   : > { %1553 = vmatprep.mubr.msk.f32.mxu0 %vm1657_vm0, %v1658_v6  ;;  %vm409_vm3 = vcmp.ne.s32.totalorder %v404_v16, 0 }
  0x13   : > { %v1777_v18 = vsel %vm409_vm3, 0.0, %v1662_v17 }
  0xe4   : > { %v400_v10 = vpop.f32.mrb[0].mxu0 }
  0xe5   : > { %v1757_v11 = vadd.f32 %v1478_v9, %v400_v10  ;;  %v1540_v12 = vpop.f32.mrb[1].mxu0 }
  0xe7   : > { %576 = vrot.lane.b32.xlu1 %v1757_v11, %s1659_s21  ;;  %412 = vrot.lane.b32.xlu0 %v1757_v11, %s1660_s22 }
  0xeb   : > { %578 = vrot.lane.b32.xlu0 %v1757_v11, %s1661_s23 }
 0x159   : > { %v413_v13 = vpop.permute.xlu0 %412  ;;  %v577_v15 = vpop.permute.xlu1 %576 }
 0x15a   : > { %1542 = vmatpush3.xpose.msk.msra.mxu1 %vm414_vm2, %v413_v13 }
 0x15b   : > { %1546 = vmatprep.subr.mxu1 %v1658_v6 }
 0x15d   : > { %1544 = vmatmul.mubr.msk.f32.vlgmr.msra.gmra.mrb[0].mxu1 %vm414_vm2, %v1757_v11  ;;  %v579_v14 = vpop.permute.xlu0 %578 }
 0x15e   : > { %1552 = vmatpush3.xpose.msk.msra.mxu0 %vm414_vm2, %v579_v14  ;;  %1548 = vmatprep.mubr.msk.f32.mxu1 %vm1657_vm0, %v1658_v6 }
 0x15f   : > { %1561 = vmatprep.subr.mxu0 %v1658_v6 }
 0x161   : > { %1554 = vmatmul.mubr.msk.f32.vlgmr.msra.gmra.mrb[2].mxu0 %vm414_vm2, %v577_v15 }
 0x162   : > { %1563 = vmatprep.mubr.msk.f32.mxu0 %vm1657_vm0, %v1658_v6  ;;  %1562 = vmatpush3.msra.mxu0 %v406_v39 }
 0x163   : > { %1571 = vmatprep.subr.mxu0 %v1658_v6 }
 0x230   : > { %v485_v19 = vpop.f32.mrb[0].mxu1 }
 0x231   : > { %v486_v20 = vadd.f32 %v485_v19, %v1777_v18  ;;  %v1545_v21 = vpop.f32.mrb[1].mxu1 }
 0x233   : > { %v489_v22 = vsel %vm414_vm2, %v486_v20, -inf }
 0x234   : > { %490 = vmax.xlane.f32.xlu1 %v489_v22  ;;  %v650_v23 = vpop.f32.mrb[2].mxu0 }
 0x235   : > { %v651_v24 = vadd.f32 %v650_v23, %v1777_v18  ;;  %v1555_v25 = vpop.f32.mrb[3].mxu0 }
 0x237   : > { %v654_v26 = vsel %vm414_vm2, %v651_v24, -inf }
 0x238   : > { %655 = vmax.xlane.f32.xlu0 %v654_v26 }
 0x245   : > { %663 = vrot.lane.b32.xlu1 %v1757_v11, %s1663_s28 }
 0x24e   : > { %498 = vrot.lane.b32.xlu0 %v1757_v11, %s1664_s29 }
 0x252   : > { %889 = vrot.lane.b32.xlu0 %v1757_v11, %s1665_s30 }
 0x256   : > { %887 = vrot.lane.b32.xlu0 %v1757_v11, %s1666_s9 }
 0x2c1   : > { %v491_v27 = vpop.xlane.xlu1 %490 }
 0x2c2   : > { %v492_v28 = vsub.f32 %v486_v20, %v491_v27  ;;  %v408_v27 = vld [vmem:[%s1871_s4 + $0x18] sm:$0xff] }
 0x2c4   : > { %v493_v29 = vmul.f32 1.442695, %v492_v28 }
 0x2c5   : > { %v656_v30 = vpop.xlane.xlu0 %655  ;;  %v664_v35 = vpop.permute.xlu1 %663 }
 0x2c6   : > { %1630 = vpow2.f32 %v493_v29  ;;  %v657_v31 = vsub.f32 %v651_v24, %v656_v30 }
 0x2c8   : > { %v658_v32 = vmul.f32 1.442695, %v657_v31 }
 0x2c9   : > { %v499_v33 = vpop.permute.xlu0 %498 }
 0x2ca   : > { %1632 = vpow2.f32 %v658_v32  ;;  %1547 = vmatpush3.msra.mxu1 %v499_v33  ;;  %v1496_v33 = vld [vmem:[%s1872_s5] ss:$0 sm:$0xff] }
 0x2cb   : > { %1556 = vmatprep.subr.mxu1 %v1658_v6 }
 0x2cd   : > { %v890_v41 = vpop.permute.xlu0 %889 }
 0x2d0   : > { %v1631_v34 = vpop.eup %1630 }
 0x2d1   : > { %1549 = vmatmul.mubr.msk.f32.vlgmr.msra.gmra.mrb[2].mxu1 %vm414_vm2, %v1631_v34  ;;  %v495_v36 = vsel %vm414_vm2, %v1631_v34, 0.0  ;;  %v888_v42 = vpop.permute.xlu0 %887 }
 0x2d2   : > { %1557 = vmatpush3.msra.mxu1 %v664_v35  ;;  %496 = vadd.xlane.f32.xlu0 %v495_v36 }
 0x2d3   : > { %1558 = vmatprep.mubr.msk.f32.mxu1 %vm1657_vm0, %v1658_v6  ;;  %1566 = vmatprep.subr.mxu1 %v1658_v6 }
 0x2d4   : > { %v1633_v37 = vpop.eup %1632 }
 0x2d5   : > { %1559 = vmatmul.mubr.msk.f32.vlgmr.msra.gmra.mrb[4].mxu1 %vm414_vm2, %v1633_v37  ;;  %v660_v38 = vsel %vm414_vm2, %v1633_v37, 0.0 }
 0x2d6   : > { %661 = vadd.xlane.f32.xlu1 %v660_v38  ;;  %1568 = vmatprep.mubr.msk.f32.mxu1 %vm1657_vm0, %v1658_v6 }
 0x2d7   : > { %1567 = vmatpush3.msra.mxu1 %v405_v40 }
 0x2d8   : > { %1576 = vmatprep.subr.mxu1 %v1658_v6 }
 0x2e7   : > { %974 = vrot.lane.b32.xlu1 %v1757_v11, %s1667_s10  ;;  %s317_s10 = scalar_lea.vmem %s1875_s8, %s1741_s15 }
 0x2e8   : > { %1128 = vrot.lane.b32.xlu0 %v1757_v11, %s1668_s11 }
 0x35f   : > { %v497_v43 = vpop.xlane.xlu0 %496 }
 0x360   : > { %1634 = vrcp.f32 %v497_v43 }
 0x363   : > { %v662_v44 = vpop.xlane.xlu1 %661  ;;  %v1129_v3 = vpop.permute.xlu0 %1128 }
 0x364   : > { %1636 = vrcp.f32 %v662_v44 }
 0x367   : > { %v975_v49 = vpop.permute.xlu1 %974 }
 0x36a   : > { %v1635_v45 = vpop.eup %1634 }
 0x36e   : > { %v1637_v50 = vpop.eup %1636 }
 0x3a4   : > { %v570_v46 = vpop.f32.mrb[2].mxu1 }
 0x3a5   : > { %v575_v47 = vmul.f32 %v1635_v45, %v570_v46  ;;  %v1550_v48 = vpop.f32.mrb[3].mxu1 }
 0x3a7   : > { %1569 = vmatmul.mubr.msk.f32.vlgmr.msra.gmra.mrb[6].mxu1 %vm414_vm2, %v575_v47 }
 0x3a8   : > { %1577 = vmatpush3.msra.mxu1 %v975_v49  ;;  %v735_v51 = vpop.f32.mrb[4].mxu1  ;;  %1578 = vmatprep.mubr.msk.f32.mxu1 %vm1657_vm0, %v1658_v6  ;;  %v1498_v49 = vld [vmem:[%s1874_s7] ss:$0 sm:$0xff] }
 0x3a9   : > { %v740_v52 = vmul.f32 %v1637_v50, %v735_v51  ;;  %v1560_v53 = vpop.f32.mrb[5].mxu1  ;;  %1586 = vmatprep.subr.mxu1 %v1658_v6 }
 0x3ab   : > { %1564 = vmatmul.mubr.msk.f32.vlgmr.msra.gmra.mrb[4].mxu0 %vm414_vm2, %v740_v52 }
 0x3ac   : > { %1572 = vmatpush3.xpose.msk.msra.mxu0 %vm414_vm2, %v890_v41  ;;  %1573 = vmatprep.mubr.msk.f32.mxu0 %vm1657_vm0, %v1658_v6 }
 0x3ad   : > { %1581 = vmatprep.subr.mxu0 %v1658_v6 }
 0x3af   : > { %1574 = vmatmul.mubr.msk.f32.vlgmr.msra.gmra.mrb[6].mxu0 %vm414_vm2, %v888_v42 }
 0x3b0   : > { %1583 = vmatprep.mubr.msk.f32.mxu0 %vm1657_vm0, %v1658_v6  ;;  %1582 = vmatpush3.msra.mxu0 %v407_v7 }
 0x3b1   : > { %1591 = vmatprep.subr.mxu0 %v1658_v6 }
 0x47a   : > { %v883_v54 = vpop.f32.mrb[6].mxu1 }
 0x47b   : > { %v1570_v55 = vpop.f32.mrb[7].mxu1 }
 0x47e   : > { %v810_v56 = vpop.f32.mrb[4].mxu0 }
 0x47f   : > { %v884_v57 = vadd.f32 %v883_v54, %v810_v56  ;;  %v1565_v58 = vpop.f32.mrb[5].mxu0 }
 0x482   : > { %v961_v59 = vpop.f32.mrb[6].mxu0 }
 0x483   : > { %v962_v60 = vadd.f32 %v961_v59, %v1777_v18  ;;  %v1575_v61 = vpop.f32.mrb[7].mxu0 }
 0x485   : > { %v965_v62 = vsel %vm414_vm2, %v962_v60, -inf }
 0x486   : > { %966 = vmax.xlane.f32.xlu1 %v965_v62 }
 0x497   : > { %1126 = vrot.lane.b32.xlu1 %v1757_v11, %s1669_s17 }
 0x513   : > { %v967_v63 = vpop.xlane.xlu1 %966 }
 0x514   : > { %v968_v0 = vsub.f32 %v962_v60, %v967_v63 }
 0x516   : > { %v969_v1 = vmul.f32 1.442695, %v968_v0 }
 0x517   : > { %v1127_v5 = vpop.permute.xlu1 %1126 }
 0x518   : > { %1638 = vpow2.f32 %v969_v1 }
 0x522   : > { %v1639_v2 = vpop.eup %1638 }
 0x523   : > { %1579 = vmatmul.mubr.msk.f32.vlgmr.msra.gmra.mrb[8].mxu1 %vm414_vm2, %v1639_v2  ;;  %v971_v4 = vsel %vm414_vm2, %v1639_v2, 0.0 }
 0x524   : > { %1587 = vmatpush3.xpose.msk.msra.mxu1 %vm414_vm2, %v1129_v3  ;;  %972 = vadd.xlane.f32.xlu1 %v971_v4 }
 0x525   : > { %1588 = vmatprep.mubr.msk.f32.mxu1 %vm1657_vm0, %v1658_v6  ;;  %1596 = vmatprep.subr.mxu1 %v1658_v6 }
 0x527   : > { %1589 = vmatmul.mubr.msk.f32.vlgmr.msra.gmra.mrb[10].mxu1 %vm414_vm2, %v1127_v5 }
 0x528   : > { %1598 = vmatprep.mubr.msk.f32.mxu1 %vm1657_vm0, %v1658_v6  ;;  %1597 = vmatpush3.msra.mxu1 %v408_v27 }
 0x5b1   : > { %v973_v9 = vpop.xlane.xlu1 %972 }
 0x5b2   : > { %1640 = vrcp.f32 %v973_v9 }
 0x5bc   : > { %v1641_v10 = vpop.eup %1640 }
 0x5f6   : > { %v1046_v12 = vpop.f32.mrb[8].mxu1 }
 0x5f7   : > { %v1051_v13 = vmul.f32 %v1641_v10, %v1046_v12  ;;  %v1580_v14 = vpop.f32.mrb[9].mxu1 }
 0x5f9   : > { %1584 = vmatmul.mubr.msk.f32.vlgmr.msra.gmra.mrb[8].mxu0 %vm414_vm2, %v1051_v13 }
 0x5fa   : > { %v1200_v15 = vpop.f32.mrb[10].mxu1  ;;  %1593 = vmatprep.mubr.msk.f32.mxu0 %vm1657_vm0, %v1658_v6 }
 0x5fb   : > { %v1201_v16 = vadd.f32 %v1200_v15, %v1777_v18  ;;  %v1590_v17 = vpop.f32.mrb[11].mxu1 }
 0x5fd   : > { %v1204_v19 = vsel %vm414_vm2, %v1201_v16, -inf }
 0x5fe   : > { %1205 = vmax.xlane.f32.xlu0 %v1204_v19 }
 0x614   : > { %1213 = vrot.lane.b32.xlu0 %v1757_v11, %s1670_s20 }
 0x68b   : > { %v1206_v20 = vpop.xlane.xlu0 %1205 }
 0x68c   : > { %v1207_v21 = vsub.f32 %v1201_v16, %v1206_v20 }
 0x68e   : > { %v1208_v22 = vmul.f32 1.442695, %v1207_v21 }
 0x68f   : > { %v1214_v23 = vpop.permute.xlu0 %1213 }
 0x690   : > { %1642 = vpow2.f32 %v1208_v22  ;;  %1592 = vmatpush3.msra.mxu0 %v1214_v23 }
 0x69a   : > { %v1643_v24 = vpop.eup %1642 }
 0x69b   : > { %1594 = vmatmul.mubr.msk.f32.vlgmr.msra.gmra.mrb[10].mxu0 %vm414_vm2, %v1643_v24  ;;  %v1210_v6 = vsel %vm414_vm2, %v1643_v24, 0.0 }
 0x69c   : > { %1211 = vadd.xlane.f32.xlu1 %v1210_v6 }
 0x6cc   : > { %v1121_v18 = vpop.f32.mrb[8].mxu0 }
 0x6cd   : > { %v1125_v25 = vadd.f32 %v1121_v18, %v884_v57  ;;  %v1585_v26 = vpop.f32.mrb[9].mxu0 }
 0x729   : > { %v1212_v11 = vpop.xlane.xlu1 %1211 }
 0x72a   : > { %1644 = vrcp.f32 %v1212_v11 }
 0x734   : > { %v1645_v28 = vpop.eup %1644 }
 0x76e   : > { %v1285_v29 = vpop.f32.mrb[10].mxu0 }
 0x76f   : > { %v1290_v30 = vmul.f32 %v1645_v28, %v1285_v29  ;;  %v1595_v31 = vpop.f32.mrb[11].mxu0 }
 0x771   : > { %1599 = vmatmul.mubr.msk.f32.vlgmr.msra.gmra.mrb[12].mxu1 %vm414_vm2, %v1290_v30 }
 0x844   : > { %v1360_v32 = vpop.f32.mrb[12].mxu1 }
 0x845   : > { %v1364_v34 = vadd.f32 %v1360_v32, %v1125_v25  ;;  %v1600_v35 = vpop.f32.mrb[13].mxu1 }
 0x847   : > { %v1372_v36 = vadd.f32 %v1496_v33, %v1364_v34 }
 0x849   : > { %v1373_v37 = vadd.f32 %v1372_v36, %v1747_v8  ;;  %v1497_v8 = vld [vmem:[%s1873_s6] ss:$0 sm:$0xff] }
 0x84b   : > { %v1376_v38 = vsel %vm330_vm1, %v1373_v37, 0.0 }
 0x84c   : > { %1377 = vadd.xlane.f32.xlu1 %v1376_v38 }
 0x8d9   : > { %v1378_v39 = vpop.xlane.xlu1 %1377 }
 0x8da   : > { %v1380_v40 = vmul.f32 0.03125, %v1378_v39 }
 0x8dc   : > { %v1381_v41 = vsub.f32 %v1373_v37, %v1380_v40 }
 0x8de   : > { %v1382_v42 = vmul.f32 %v1381_v41, %v1381_v41 }
 0x8e0   : > { %v1383_v43 = vsel %vm330_vm1, %v1382_v42, 0.0 }
 0x8e1   : > { %1384 = vadd.xlane.f32.xlu1 %v1383_v43 }
 0x96e   : > { %v1385_v44 = vpop.xlane.xlu1 %1384 }
 0x96f   : > { %v1386_v45 = vmul.f32 0.03125, %v1385_v44 }
 0x971   : > { %v1387_v46 = vadd.f32 1e-05, %v1386_v45 }
 0x973   : > { %1646 = vrsqrt.f32 %v1387_v46 }
 0x97d   : > { %v1647_v47 = vpop.eup %1646 }
 0x97e   : > { %v1389_v48 = vmul.f32 %v1647_v47, %v1381_v41 }
 0x980   : > { %v1396_v50 = vmul.f32 %v1497_v8, %v1389_v48 }
 0x982   : > { %v1403_v51 = vadd.f32 %v1498_v49, %v1396_v50 }
 0x984   : > { %1404 = vst.msk [vmem:[%s317_s10] sm:$0xff] %vm330_vm1, %v1403_v51 }
 0x985 PF: > { %s18_s27 = sadd.s32 1, %s1654_s27  }
 0x986   : > { %p15_p4 = scmp.ge.s32.totalorder %s18_s27, 4  }
 0x988   :  { %17 = sbr.rel (!%p15_p4) target bundleno = 1 (0x1), region = 85 }

// kernel: decoder_forward.8
= control target key start
LH: loop header
LB: loop body
LE: loop exit
PB: predicated region body
PF: predicated region fallthrough
CT: control target
= control target key end

     0   :  { %s1941_s17 = smov 0   ;;  %s2115_s0 = inlined_call_operand.vmem [shape: f32[2,8,32], index: 0, kind: input, shape index: {}]   ;;  %s2116_s1 = inlined_call_operand.vmem [shape: f32[2,8,32], index: 1, kind: input, shape index: {}]   ;;  %s2117_s2 = inlined_call_operand.vmem [shape: s32[2,1,8], index: 2, kind: input, shape index: {}]   ;;  %s2118_s3 = inlined_call_operand.vmem [shape: f32[32,32], index: 3, kind: input, shape index: {}]   ;;  %s2119_s4 = inlined_call_operand.vmem [shape: f32[1,32], index: 4, kind: input, shape index: {}]   ;;  %s2120_s5 = inlined_call_operand.vmem [shape: f32[32,64], index: 5, kind: input, shape index: {}]   ;;  %s2121_s6 = inlined_call_operand.vmem [shape: f32[1,64], index: 6, kind: input, shape index: {}]   ;;  %s2122_s7 = inlined_call_operand.vmem [shape: f32[32,32], index: 7, kind: input, shape index: {}]   ;;  %s2123_s8 = inlined_call_operand.vmem [shape: f32[1,32], index: 8, kind: input, shape index: {}]   ;;  %s2124_s9 = inlined_call_operand.vmem [shape: f32[1,32], index: 9, kind: input, shape index: {}]   ;;  %s2125_s10 = inlined_call_operand.vmem [shape: f32[1,32], index: 10, kind: input, shape index: {}]   ;;  %s2126_s11 = inlined_call_operand.vmem [shape: f32[2,8,32], index: 11, kind: output, shape index: {}]  }
   0x1 LB: > { %s1664_s18 = sadd.s32 4294967295, %s1868_s17   ;;  %p1668_p0 = scmp.ge.s32.totalorder %s1868_s17, 1  ;;  %s1868_s17 = sphi %s1941_s17, %s21_s17  }
   0x2   : > { %p353_p1 = scmp.lt.s32.totalorder %s1868_s17, 3 }
   0x4   : > { %p354_p2 = pnand %p1668_p0, %p353_p1 }
   0x5   : > { %v500_v0 = vld [vmem:[%s2120_s5] sm:$0xff] (!%p354_p2)  ;;  %v501_v1 = vld [vmem:[%s2120_s5 + $0x8] sm:$0xff] (!%p354_p2)  ;;  %v1870_v3 = vmov (!%p354_p2), 0.0|0.0   ;;  %v502_v6 = vld [vmem:[%s2120_s5 + $0x10] sm:$0xff] (!%p354_p2)  ;;  %p398_p3 = scmp.lt.s32.totalorder (!%p354_p2), %s1664_s18, 1  ;;  %vm1871_vm0 = vmmov (!%p354_p2), 0   ;;  %v592_v27 = vlaneseq (!%p354_p2) }
   0x6   : > { %357 = sbr.rel (%p354_p2) target bundleno = 2434 (0x982), region = 64  ;;  %v415_v2 = vld [vmem:[%s2118_s3] sm:$0xff] (!%p354_p2)  ;;  %1819 = vmatprep.subr.bf16.mxu1 (!%p354_p2), %v1870_v3  ;;  %v1820_v4 = vpack.c.bf16 (!%p354_p2), %v501_v1, %v500_v0  ;;  %1813 = vmatprep.subr.bf16.mxu0 (!%p354_p2), %v1870_v3  ;;  %v416_v5 = vld [vmem:[%s2118_s3 + $0x8] sm:$0xff] (!%p354_p2)  ;;  %v503_v7 = vld [vmem:[%s2120_s5 + $0x18] sm:$0xff] (!%p354_p2)  ;;  %v1872_v9 = vmov (!%p354_p2), 0.0   ;;  %vm426_vm1 = vcmask (!%p354_p2), 261120  }
   0x7   : > { %v1814_v8 = vpack.c.bf16 (!%p354_p2), %v416_v5, %v415_v2  ;;  %1750 = vmatprep.mubr.msk.f32.mxu1 (!%p354_p2), %vm1871_vm0, %v1872_v9  ;;  %v417_v10 = vld [vmem:[%s2118_s3 + $0x10] sm:$0xff] (!%p354_p2)  ;;  %v418_v11 = vld [vmem:[%s2118_s3 + $0x18] sm:$0xff] (!%p354_p2)  ;;  %1739 = vmatprep.mubr.msk.f32.mxu0 (!%p354_p2), %vm1871_vm0, %v1872_v9  ;;  %v1823_v12 = vpack.c.bf16 (!%p354_p2), %v503_v7, %v502_v6  ;;  %v1674_v16 = vld [vmem:[%s2121_s6] ss:$0 sm:$0xff] (!%p354_p2)  ;;  %vm597_vm2 = vcmask (!%p354_p2), 64512   ;;  %s1873_s29 = smov (!%p354_p2), 120  }
   0x8   : > { %1821 = vmatpush3.bf16.msra.mxu1 (!%p354_p2), %v1820_v4  ;;  %v1817_v13 = vpack.c.bf16 (!%p354_p2), %v418_v11, %v417_v10  ;;  %v1672_v17 = vld [vmem:[%s2119_s4] ss:$0 sm:$0xff] (!%p354_p2)  ;;  %s1874_s30 = smov (!%p354_p2), 96   ;;  %v593_v29 = vshrl.u32 (!%p354_p2), %v592_v27, 7  ;;  %v1875_v31 = vmov (!%p354_p2), -1e+09  }
   0x9   : > { %1815 = vmatpush3.bf16.msra.mxu0 (!%p354_p2), %v1814_v8  ;;  %1822 = vmatprep.subr.bf16.mxu1 (!%p354_p2), %v1870_v3  ;;  %s1877_s15 = smov (!%p354_p2), 112   ;;  %s1878_s19 = smov (!%p354_p2), 104   ;;  %v585_v51 = vld [vmem:[%s2122_s7] sm:$0xff] (!%p354_p2)  ;;  %v586_v54 = vld [vmem:[%s2122_s7 + $0x8] sm:$0xff] (!%p354_p2) }
   0xa   : > { %1816 = vmatprep.subr.bf16.mxu0 (!%p354_p2), %v1870_v3  ;;  %v594_v30 = vsub.s32 (!%p354_p2), 0, %v593_v29  ;;  %s1880_s25 = smov (!%p354_p2), 72  }
   0xc   : > { %1824 = vmatpush3.bf16.msra.mxu1 (!%p354_p2), %v1823_v12 }
   0xd   : > { %s2128_s18 = smov (!%p398_p3, %s1664_s18), 1  ;;  %1818 = vmatpush3.bf16.msra.mxu0 %v1817_v13  ;;  %1758 = vmatprep.subr.mxu1 %v1872_v9 }
   0xe   : > { %s1980_s16 = sshll.u32 %s2128_s18, 3  ;;  %1753 = vmatprep.subr.mxu0 %v1872_v9  ;;  %s408_s14 = scalar_lea.vmem %s2117_s2, %s2128_s18 }
   0xf   : > { %s405_s21 = scalar_lea.vmem %s2116_s1, %s1980_s16  ;;  %s401_s24 = scalar_lea.vmem %s2115_s0, %s1980_s16  ;;  %v584_v28 = vld [vmem:[%s408_s14] sm:$0x1] }
  0x10   : > { %v414_v14 = vld [vmem:[%s405_s21] sm:$0xff]  ;;  %vm589_vm3 = vcmp.ne.s32.totalorder %v584_v28, 0  ;;  %s1876_s18 = smov 88   ;;  %s412_s21 = scalar_lea.vmem %s2126_s11, %s1980_s16 }
  0x11   : > { %v1990_v15 = vld [vmem:[%s401_s24] sm:$0xff]  ;;  %1751 = vmatmul.mubr.msk.f32.vlgmr.msra.gmra.mrb[0].mxu1 %vm426_vm1, %v414_v14  ;;  %v590_v32 = vsel %vm589_vm3, 0.0, %v1875_v31  ;;  %s1879_s24 = smov 80  }
  0x12   : > { %1740 = vmatmul.mubr.msk.f32.vlgmr.msra.gmra.mrb[0].mxu0 %vm426_vm1, %v1990_v15  ;;  %1760 = vmatprep.mubr.msk.f32.mxu1 %vm1871_vm0, %v1872_v9  ;;  %v2027_v33 = vrot.slane %v590_v32, %v594_v30 }
  0x13   : > { %1755 = vmatprep.mubr.msk.f32.mxu0 %vm1871_vm0, %v1872_v9 }
  0xe4   : > { %v580_v18 = vpop.f32.mrb[0].mxu1 }
  0xe5   : > { %v2007_v19 = vadd.f32 %v1674_v16, %v580_v18  ;;  %v1752_v20 = vpop.f32.mrb[1].mxu1  ;;  %v496_v21 = vpop.f32.mrb[0].mxu0 }
  0xe6   : > { %v497_v22 = vadd.f32 %v1672_v17, %v496_v21  ;;  %v1741_v23 = vpop.f32.mrb[1].mxu0 }
  0xe7   : > { %763 = vrot.lane.b32.xlu0 %v2007_v19, %s1873_s29  ;;  %1754 = vmatpush3.xpose.msk.msra.mxu0 %vm597_vm2, %v2007_v19  ;;  %v587_v23 = vld [vmem:[%s2122_s7 + $0x10] sm:$0xff] }
  0xe8   : > { %1763 = vmatprep.subr.mxu0 %v1872_v9 }
  0xea   : > { %1756 = vmatmul.mubr.msk.f32.vlgmr.msra.gmra.mrb[2].mxu0 %vm597_vm2, %v497_v22 }
  0xeb   : > { %761 = vrot.lane.b32.xlu0 %v497_v22, %s1873_s29  ;;  %1765 = vmatprep.mubr.msk.f32.mxu0 %vm1871_vm0, %v1872_v9 }
  0xef   : > { %683 = vrot.lane.b32.xlu0 %v2007_v19, %s1874_s30 }
 0x159   : > { %v764_v24 = vpop.permute.xlu0 %763 }
 0x15a   : > { %1764 = vmatpush3.xpose.msk.msra.mxu0 %vm597_vm2, %v764_v24 }
 0x15b   : > { %1773 = vmatprep.subr.mxu0 %v1872_v9 }
 0x15d   : > { %v762_v25 = vpop.permute.xlu0 %761 }
 0x15e   : > { %1766 = vmatmul.mubr.msk.f32.vlgmr.msra.gmra.mrb[4].mxu0 %vm597_vm2, %v762_v25 }
 0x15f   : > { %1775 = vmatprep.mubr.msk.f32.mxu0 %vm1871_vm0, %v1872_v9  ;;  %1774 = vmatpush3.msra.mxu0 %v586_v54 }
 0x160   : > { %1783 = vmatprep.subr.mxu0 %v1872_v9 }
 0x161   : > { %v684_v26 = vpop.permute.xlu0 %683 }
 0x162   : > { %1759 = vmatpush3.msra.mxu1 %v684_v26 }
 0x163   : > { %1768 = vmatprep.subr.mxu1 %v1872_v9 }
 0x1bd   : > { %v670_v34 = vpop.f32.mrb[2].mxu0 }
 0x1be   : > { %v671_v35 = vadd.f32 %v670_v34, %v2027_v33  ;;  %v1757_v36 = vpop.f32.mrb[3].mxu0 }
 0x1c0   : > { %v674_v37 = vsel %vm597_vm2, %v671_v35, -inf }
 0x1c1   : > { %675 = vmax.xlane.f32.xlu1 %v674_v37 }
 0x231   : > { %v835_v38 = vpop.f32.mrb[4].mxu0 }
 0x232   : > { %v836_v39 = vadd.f32 %v835_v38, %v2027_v33  ;;  %v1767_v40 = vpop.f32.mrb[5].mxu0 }
 0x234   : > { %v839_v41 = vsel %vm597_vm2, %v836_v39, -inf }
 0x235   : > { %840 = vmax.xlane.f32.xlu1 %v839_v41 }
 0x246   : > { %848 = vrot.lane.b32.xlu1 %v2007_v19, %s1876_s18 }
 0x24a   : > { %1074 = vrot.lane.b32.xlu1 %v2007_v19, %s1877_s15 }
 0x24e   : > { %v676_v42 = vpop.xlane.xlu1 %675  ;;  %1072 = vrot.lane.b32.xlu1 %v497_v22, %s1877_s15 }
 0x24f   : > { %v677_v43 = vsub.f32 %v671_v35, %v676_v42 }
 0x251   : > { %v678_v44 = vmul.f32 1.442695, %v677_v43 }
 0x253   : > { %1844 = vpow2.f32 %v678_v44 }
 0x25d   : > { %v1845_v45 = vpop.eup %1844 }
 0x25e   : > { %1761 = vmatmul.mubr.msk.f32.vlgmr.msra.gmra.mrb[2].mxu1 %vm597_vm2, %v1845_v45  ;;  %v680_v46 = vsel %vm597_vm2, %v1845_v45, 0.0 }
 0x25f   : > { %1770 = vmatprep.mubr.msk.f32.mxu1 %vm1871_vm0, %v1872_v9 }
 0x272   : > { %681 = vadd.xlane.f32.xlu1 %v680_v46 }
 0x283   : > { %1311 = vrot.lane.b32.xlu1 %v497_v22, %s1878_s19 }
 0x2c2   : > { %v841_v47 = vpop.xlane.xlu1 %840 }
 0x2c3   : > { %v842_v48 = vsub.f32 %v836_v39, %v841_v47  ;;  %v1692_v47 = vld [vmem:[%s2123_s8] ss:$0 sm:$0xff] }
 0x2c5   : > { %v843_v49 = vmul.f32 1.442695, %v842_v48 }
 0x2c6   : > { %v849_v50 = vpop.permute.xlu1 %848 }
 0x2c7   : > { %1846 = vpow2.f32 %v843_v49  ;;  %1769 = vmatpush3.msra.mxu1 %v849_v50 }
 0x2c8   : > { %1778 = vmatprep.subr.mxu1 %v1872_v9 }
 0x2ca   : > { %v1075_v55 = vpop.permute.xlu1 %1074 }
 0x2ce   : > { %v1073_v56 = vpop.permute.xlu1 %1072 }
 0x2d1   : > { %v1847_v52 = vpop.eup %1846 }
 0x2d2   : > { %1771 = vmatmul.mubr.msk.f32.vlgmr.msra.gmra.mrb[4].mxu1 %vm597_vm2, %v1847_v52  ;;  %v845_v53 = vsel %vm597_vm2, %v1847_v52, 0.0 }
 0x2d3   : > { %846 = vadd.xlane.f32.xlu0 %v845_v53  ;;  %1779 = vmatpush3.msra.mxu1 %v585_v51 }
 0x2d4   : > { %1780 = vmatprep.mubr.msk.f32.mxu1 %vm1871_vm0, %v1872_v9  ;;  %1788 = vmatprep.subr.mxu1 %v1872_v9 }
 0x2e9   : > { %1159 = vrot.lane.b32.xlu0 %v2007_v19, %s1879_s24 }
 0x2ff   : > { %v682_v57 = vpop.xlane.xlu1 %681 }
 0x300   : > { %1848 = vrcp.f32 %v682_v57 }
 0x303   : > { %v1312_v22 = vpop.permute.xlu1 %1311 }
 0x30a   : > { %v1849_v58 = vpop.eup %1848 }
 0x331   : > { %v755_v59 = vpop.f32.mrb[2].mxu1 }
 0x332   : > { %v760_v60 = vmul.f32 %v1849_v58, %v755_v59  ;;  %v1762_v61 = vpop.f32.mrb[3].mxu1 }
 0x334   : > { %1781 = vmatmul.mubr.msk.f32.vlgmr.msra.gmra.mrb[6].mxu1 %vm597_vm2, %v760_v60 }
 0x335   : > { %1790 = vmatprep.mubr.msk.f32.mxu1 %vm1871_vm0, %v1872_v9 }
 0x360   : > { %v847_v62 = vpop.xlane.xlu0 %846 }
 0x361   : > { %1850 = vrcp.f32 %v847_v62 }
 0x364   : > { %v1160_v63 = vpop.permute.xlu0 %1159 }
 0x365   : > { %1789 = vmatpush3.msra.mxu1 %v1160_v63  ;;  %v1694_v63 = vld [vmem:[%s2125_s10] ss:$0 sm:$0xff] }
 0x366   : > { %1798 = vmatprep.subr.mxu1 %v1872_v9 }
 0x36b   : > { %v1851_v0 = vpop.eup %1850 }
 0x3a5   : > { %v920_v1 = vpop.f32.mrb[4].mxu1 }
 0x3a6   : > { %v925_v2 = vmul.f32 %v1851_v0, %v920_v1  ;;  %v1772_v3 = vpop.f32.mrb[5].mxu1 }
 0x3a8   : > { %1776 = vmatmul.mubr.msk.f32.vlgmr.msra.gmra.mrb[6].mxu0 %vm597_vm2, %v925_v2 }
 0x3a9   : > { %1784 = vmatpush3.xpose.msk.msra.mxu0 %vm597_vm2, %v1075_v55  ;;  %1785 = vmatprep.mubr.msk.f32.mxu0 %vm1871_vm0, %v1872_v9 }
 0x3aa   : > { %1793 = vmatprep.subr.mxu0 %v1872_v9 }
 0x3ac   : > { %1786 = vmatmul.mubr.msk.f32.vlgmr.msra.gmra.mrb[8].mxu0 %vm597_vm2, %v1073_v56 }
 0x3ad   : > { %1795 = vmatprep.mubr.msk.f32.mxu0 %vm1871_vm0, %v1872_v9  ;;  %1794 = vmatpush3.msra.mxu0 %v587_v23 }
 0x3ae   : > { %1803 = vmatprep.subr.mxu0 %v1872_v9 }
 0x407   : > { %v1068_v4 = vpop.f32.mrb[6].mxu1 }
 0x408   : > { %v1782_v5 = vpop.f32.mrb[7].mxu1 }
 0x47b   : > { %v995_v6 = vpop.f32.mrb[6].mxu0 }
 0x47c   : > { %v1069_v7 = vadd.f32 %v1068_v4, %v995_v6  ;;  %v1777_v8 = vpop.f32.mrb[7].mxu0 }
 0x47f   : > { %v1146_v10 = vpop.f32.mrb[8].mxu0 }
 0x480   : > { %v1147_v11 = vadd.f32 %v1146_v10, %v2027_v33  ;;  %v1787_v12 = vpop.f32.mrb[9].mxu0 }
 0x482   : > { %v1150_v13 = vsel %vm597_vm2, %v1147_v11, -inf }
 0x483   : > { %1151 = vmax.xlane.f32.xlu0 %v1150_v13 }
 0x499   : > { %1313 = vrot.lane.b32.xlu0 %v2007_v19, %s1878_s19 }
 0x510   : > { %v1152_v14 = vpop.xlane.xlu0 %1151 }
 0x511   : > { %v1153_v16 = vsub.f32 %v1147_v11, %v1152_v14 }
 0x513   : > { %v1154_v17 = vmul.f32 1.442695, %v1153_v16 }
 0x514   : > { %v1314_v20 = vpop.permute.xlu0 %1313 }
 0x515   : > { %1852 = vpow2.f32 %v1154_v17 }
 0x51f   : > { %v1853_v18 = vpop.eup %1852 }
 0x520   : > { %1791 = vmatmul.mubr.msk.f32.vlgmr.msra.gmra.mrb[8].mxu1 %vm597_vm2, %v1853_v18  ;;  %v1156_v21 = vsel %vm597_vm2, %v1853_v18, 0.0 }
 0x521   : > { %1799 = vmatpush3.xpose.msk.msra.mxu1 %vm597_vm2, %v1314_v20  ;;  %1157 = vadd.xlane.f32.xlu0 %v1156_v21 }
 0x522   : > { %1800 = vmatprep.mubr.msk.f32.mxu1 %vm1871_vm0, %v1872_v9  ;;  %1808 = vmatprep.subr.mxu1 %v1872_v9 }
 0x524   : > { %1801 = vmatmul.mubr.msk.f32.vlgmr.msra.gmra.mrb[10].mxu1 %vm597_vm2, %v1312_v22 }
 0x525   : > { %1810 = vmatprep.mubr.msk.f32.mxu1 %vm1871_vm0, %v1872_v9 }
 0x537   : > { %1398 = vrot.lane.b32.xlu0 %v2007_v19, %s1880_s25 }
 0x5ae   : > { %v1158_v24 = vpop.xlane.xlu0 %1157 }
 0x5af   : > { %1854 = vrcp.f32 %v1158_v24 }
 0x5b2   : > { %v1399_v29 = vpop.permute.xlu0 %1398 }
 0x5b9   : > { %v1855_v25 = vpop.eup %1854 }
 0x5f3   : > { %v1231_v26 = vpop.f32.mrb[8].mxu1 }
 0x5f4   : > { %v1236_v27 = vmul.f32 %v1855_v25, %v1231_v26  ;;  %v1792_v28 = vpop.f32.mrb[9].mxu1 }
 0x5f6   : > { %1796 = vmatmul.mubr.msk.f32.vlgmr.msra.gmra.mrb[10].mxu0 %vm597_vm2, %v1236_v27 }
 0x5f7   : > { %1804 = vmatpush3.msra.mxu0 %v1399_v29  ;;  %v1385_v30 = vpop.f32.mrb[10].mxu1  ;;  %1805 = vmatprep.mubr.msk.f32.mxu0 %vm1871_vm0, %v1872_v9  ;;  %v588_v9 = vld [vmem:[%s2122_s7 + $0x18] sm:$0xff] }
 0x5f8   : > { %v1386_v19 = vadd.f32 %v1385_v30, %v2027_v33  ;;  %v1802_v31 = vpop.f32.mrb[11].mxu1  ;;  %1809 = vmatpush3.msra.mxu1 %v588_v9 }
 0x5fa   : > { %v1389_v32 = vsel %vm597_vm2, %v1386_v19, -inf }
 0x5fb   : > { %1390 = vmax.xlane.f32.xlu1 %v1389_v32 }
 0x688   : > { %v1391_v34 = vpop.xlane.xlu1 %1390 }
 0x689   : > { %v1392_v35 = vsub.f32 %v1386_v19, %v1391_v34 }
 0x68b   : > { %v1393_v36 = vmul.f32 1.442695, %v1392_v35 }
 0x68d   : > { %1856 = vpow2.f32 %v1393_v36 }
 0x697   : > { %v1857_v37 = vpop.eup %1856 }
 0x698   : > { %1806 = vmatmul.mubr.msk.f32.vlgmr.msra.gmra.mrb[12].mxu0 %vm597_vm2, %v1857_v37  ;;  %v1395_v38 = vsel %vm597_vm2, %v1857_v37, 0.0 }
 0x699   : > { %1396 = vadd.xlane.f32.xlu1 %v1395_v38 }
 0x6c9   : > { %v1306_v33 = vpop.f32.mrb[10].mxu0 }
 0x6ca   : > { %v1310_v39 = vadd.f32 %v1306_v33, %v1069_v7  ;;  %v1797_v40 = vpop.f32.mrb[11].mxu0 }
 0x726   : > { %v1397_v41 = vpop.xlane.xlu1 %1396 }
 0x727   : > { %1858 = vrcp.f32 %v1397_v41 }
 0x731   : > { %v1859_v42 = vpop.eup %1858 }
 0x76b   : > { %v1470_v43 = vpop.f32.mrb[12].mxu0 }
 0x76c   : > { %v1475_v44 = vmul.f32 %v1859_v42, %v1470_v43  ;;  %v1807_v45 = vpop.f32.mrb[13].mxu0 }
 0x76e   : > { %1811 = vmatmul.mubr.msk.f32.vlgmr.msra.gmra.mrb[12].mxu1 %vm597_vm2, %v1475_v44 }
 0x841   : > { %v1545_v46 = vpop.f32.mrb[12].mxu1 }
 0x842   : > { %v1549_v48 = vadd.f32 %v1545_v46, %v1310_v39  ;;  %v1812_v49 = vpop.f32.mrb[13].mxu1 }
 0x844   : > { %v1557_v50 = vadd.f32 %v1692_v47, %v1549_v48 }
 0x846   : > { %v1558_v51 = vadd.f32 %v1557_v50, %v1990_v15  ;;  %v1693_v15 = vld [vmem:[%s2124_s9] ss:$0 sm:$0xff] }
 0x848   : > { %v1561_v52 = vsel %vm426_vm1, %v1558_v51, 0.0 }
 0x849   : > { %1562 = vadd.xlane.f32.xlu0 %v1561_v52 }
 0x8d6   : > { %v1563_v53 = vpop.xlane.xlu0 %1562 }
 0x8d7   : > { %v1565_v54 = vmul.f32 0.03125, %v1563_v53 }
 0x8d9   : > { %v1566_v55 = vsub.f32 %v1558_v51, %v1565_v54 }
 0x8db   : > { %v1567_v56 = vmul.f32 %v1566_v55, %v1566_v55 }
 0x8dd   : > { %v1568_v57 = vsel %vm426_vm1, %v1567_v56, 0.0 }
 0x8de   : > { %1569 = vadd.xlane.f32.xlu1 %v1568_v57 }
 0x96b   : > { %v1570_v58 = vpop.xlane.xlu1 %1569 }
 0x96c   : > { %v1571_v59 = vmul.f32 0.03125, %v1570_v58 }
 0x96e   : > { %v1572_v60 = vadd.f32 1e-05, %v1571_v59 }
 0x970   : > { %1860 = vrsqrt.f32 %v1572_v60 }
 0x97a   : > { %v1861_v61 = vpop.eup %1860 }
 0x97b   : > { %v1574_v62 = vmul.f32 %v1861_v61, %v1566_v55 }
 0x97d   : > { %v1581_v0 = vmul.f32 %v1693_v15, %v1574_v62 }
 0x97f   : > { %v1588_v1 = vadd.f32 %v1694_v63, %v1581_v0 }
 0x981   : > { %1589 = vst.msk [vmem:[%s412_s21] sm:$0xff] %vm426_vm1, %v1588_v1 }
 0x982 PF: > { %s21_s17 = sadd.s32 1, %s1868_s17  }
 0x983   : > { %p18_p4 = scmp.ge.s32.totalorder %s21_s17, 4  }
 0x985   :  { %20 = sbr.rel (!%p18_p4) target bundleno = 1 (0x1), region = 100 }

</bundles_post_ra>
